<compile_context>
chip_gen: v5e
topology: v5e:2x2
jax: 0.10.0
libtpu: 0.0.40
codegen_flags: <defaults>
</compile_context>

<pallas_src>
import functools

import jax
import jax.numpy as jnp
from jax.experimental import pallas as pl
from jax.experimental.pallas import tpu as pltpu  # noqa: F401  (TPU backend)


# ----------------------------------------------------------------------------
# The single fused kernel
# ----------------------------------------------------------------------------
def _fused_kernel(*refs, N, C0, dims):
    """refs = [x3] + sum_s [wrow_s, brow_s, srow_s, scol_s] + 8 head refs + [o].

    x3     : (N*C0, H0, W0) f32             input, NCHW with (N,C) flattened
    wrow_s : (3, Cin*W, Cout*W) bf16         banded conv weights (kw + pad folded in)
    brow_s : (1, Cout*W) f32                 bias repeated over w positions
    srow_s : (Ho, H-1) f32                   0/1 even-row selection (H pool)
    scol_s : (Cout*W-1, Cout*Wo) f32         0/1 even-col selection (W pool)
    head   : w1T (flat,hid), b1 (1,hid), w2T, b2, wcT (hid,E), bc (1,E),
             wdirT (E,E), wnrm (1,E)         all f32
    o      : (N, E) f32
    """
    n_conv = len(dims)
    x_ref = refs[0]
    conv_refs = refs[1:1 + 4 * n_conv]
    (wf1, bf1, wf2, bf2, wcl, bcl, wdir, wnrm) = refs[1 + 4 * n_conv: 9 + 4 * n_conv]
    o_ref = refs[9 + 4 * n_conv]

    f32 = jnp.float32
    H0, W0, _, _ = dims[0]

    # --- in-kernel NCHW -> channel-major rows + zero row padding --------------
    # (the channel-major (h, c*W+w) layout makes the "transpose" a block copy;
    #  column padding is folded into the banded weights, only rows need zeros)
    zrow0 = jnp.zeros((1, C0 * W0), f32)
    blocks = []
    for n in range(N):
        img = jnp.concatenate([x_ref[n * C0 + c] for c in range(C0)], axis=1)  # (H0, C0*W0)
        blocks.extend([zrow0, img.astype(f32), zrow0])
    xp = jnp.concatenate(blocks, axis=0)                      # (N*(H0+2), C0*W0)

    f = None
    # --- conv blocks: conv3x3(pad=1) + bias + ReLU + 2x2 maxpool --------------
    for s in range(n_conv):
        H, W, Cin, Cout = dims[s]
        wrow, brow, srow, scol = conv_refs[4 * s: 4 * s + 4]
        R = N * (H + 2)
        Ho, Wo = H // 2, W // 2

        # cast the padded tile to bf16 ONCE for all three kh-tap matmuls
        xin = xp.astype(jnp.bfloat16)                          # (R, Cin*W)
        p0 = jnp.dot(xin, wrow[0], preferred_element_type=f32)  # (R, Cout*W)
        p1 = jnp.dot(xin, wrow[1], preferred_element_type=f32)
        p2 = jnp.dot(xin, wrow[2], preferred_element_type=f32)
        # kh taps as row-shifted adds (stays intra-image thanks to the pad rows)
        acc = p0[0:R - 2, :] + p1[1:R - 1, :] + p2[2:R, :]      # (R-2, Cout*W)
        y = jnp.maximum(acc + brow[...], 0.0)

        # 2x2 max-pool: pairwise maxima via shifted contiguous slices, then
        # compaction of even rows / even columns by tiny 0/1 matmuls (MXU idle).
        a = jnp.maximum(y[:-1, :], y[1:, :])                    # H pairs
        b = jnp.maximum(a[:, :-1], a[:, 1:])                    # W pairs
        bs = jnp.dot(b, scol[...], preferred_element_type=f32)  # even cols -> (R-3, Cout*Wo)

        pooled = []
        for n in range(N):
            blk = bs[n * (H + 2): n * (H + 2) + H - 1, :]       # image n's rows
            pooled.append(jnp.dot(srow[...], blk,
                                  preferred_element_type=f32))  # (Ho, Cout*Wo)

        if s + 1 < n_conv:
            # next stage's padded, channel-major input (zero rows = H padding)
            zrow = jnp.zeros((1, Cout * Wo), f32)
            nxt = []
            for n in range(N):
                nxt.extend([zrow, pooled[n], zrow])
            xp = jnp.concatenate(nxt, axis=0)                   # (N*(Ho+2), Cout*Wo)
        else:
            # flatten each image (h, c, w) into lanes -> (N, Hf*Cf*Wf)
            rows = []
            for n in range(N):
                rows.append(jnp.concatenate(
                    [pooled[n][h:h + 1, :] for h in range(Ho)], axis=1))
            f = jnp.concatenate(rows, axis=0)                   # (N, flat)

    # --- fc -> classifier -> Poincare head (batch in M, f32) ------------------
    h1 = jnp.maximum(jnp.dot(f, wf1[...], preferred_element_type=f32) + bf1[...], 0.0)
    h2 = jnp.maximum(jnp.dot(h1, wf2[...], preferred_element_type=f32) + bf2[...], 0.0)
    yv = jnp.dot(h2, wcl[...], preferred_element_type=f32) + bcl[...]          # (N, E)
    d = jnp.dot(yv, wdir[...], preferred_element_type=f32)                     # (N, E)
    nm = jnp.sum(yv * wnrm[...], axis=-1, keepdims=True)                       # (N, 1)
    # v = dir / ||dir||  (rsqrt on the EUP; eps for robustness)
    v = d * jax.lax.rsqrt(jnp.sum(d * d, axis=-1, keepdims=True) + 1e-12)
    # p = sigmoid(norm)  via exp + approx reciprocal (both EUP; no f32 divide)
    p = pl.reciprocal(1.0 + jnp.exp(-nm), approx=True)
    o_ref[...] = (p * v).astype(o_ref.dtype)


# ----------------------------------------------------------------------------
# Parameters (torch-layout) and one-time preprocessing (hoisted out of forward)
# ----------------------------------------------------------------------------
def init_params(key, in_ch=3, conv_channels=(8, 16, 16), spatial=16,
                hidden=32, n_emb_dims=8):
    params = {"convs": []}
    keys = jax.random.split(key, 2 * len(conv_channels) + 8)
    ki = 0
    c_in = in_ch
    for c_out in conv_channels:
        w = jax.random.uniform(keys[ki], (c_out, c_in, 3, 3), jnp.float32,
                               -0.05, 0.05); ki += 1
        b = jax.random.uniform(keys[ki], (c_out,), jnp.float32,
                               -0.05, 0.05); ki += 1
        params["convs"].append((w, b))
        c_in = c_out
    feat_spatial = spatial // (2 ** len(conv_channels))
    flat_dim = c_in * feat_spatial * feat_spatial
    params["fc1"] = (
        jax.random.uniform(keys[ki], (hidden, flat_dim), jnp.float32, -0.05, 0.05),
        jax.random.uniform(keys[ki + 1], (hidden,), jnp.float32, -0.05, 0.05))
    ki += 2
    params["fc2"] = (
        jax.random.uniform(keys[ki], (hidden, hidden), jnp.float32, -0.05, 0.05),
        jax.random.uniform(keys[ki + 1], (hidden,), jnp.float32, -0.05, 0.05))
    ki += 2
    params["cls"] = (
        jax.random.uniform(keys[ki], (n_emb_dims, hidden), jnp.float32, -0.05, 0.05),
        jax.random.uniform(keys[ki + 1], (n_emb_dims,), jnp.float32, -0.05, 0.05))
    ki += 2
    # dir_func / norm_func: bias-free, init U(-0.001, 0.001) as in the reference
    params["dir"] = jax.random.uniform(keys[ki], (n_emb_dims, n_emb_dims),
                                       jnp.float32, -0.001, 0.001); ki += 1
    params["norm"] = jax.random.uniform(keys[ki], (1, n_emb_dims),
                                        jnp.float32, -0.001, 0.001); ki += 1
    return params


def prepare_params(params, in_ch, spatial):
    """One-time, outside the hot path: build kernel-ready weights."""
    pp = {"wrow": [], "brow": [], "srow": [], "scol": []}
    H = W = spatial
    Cin = in_ch
    for (w, b) in params["convs"]:
        Cout = w.shape[0]
        # shift[kw, wi, wo] = 1 iff wi == wo + kw - 1  (absorbs zero W-padding)
        wi = jnp.arange(W)
        kw = jnp.arange(3)
        shift = (wi[None, :, None] ==
                 (wi[None, None, :] + kw[:, None, None] - 1)).astype(jnp.float32)
        wk = jnp.transpose(w, (2, 3, 1, 0))                    # (kh, kw, ci, co)
        wrow = jnp.einsum('kuv,hkio->hiuov', shift, wk)         # (kh, ci, wi, co, wo)
        wrow = wrow.reshape(3, Cin * W, Cout * W).astype(jnp.bfloat16)
        brow = jnp.repeat(b.astype(jnp.float32), W)[None, :]    # (1, Cout*W)
        Ho, Wo = H // 2, W // 2
        Ccol = Cout * W
        scol = (jnp.arange(Ccol - 1)[:, None] ==
                2 * jnp.arange(Ccol // 2)[None, :]).astype(jnp.float32)
        srow = (2 * jnp.arange(Ho)[:, None] ==
                jnp.arange(H - 1)[None, :]).astype(jnp.float32)
        pp["wrow"].append(wrow)
        pp["brow"].append(brow)
        pp["srow"].append(srow)
        pp["scol"].append(scol)
        H, W, Cin = Ho, Wo, Cout

    Hf, Wf, Cf = H, W, Cin
    w1, b1 = params["fc1"]
    hidden = w1.shape[0]
    # permute fc1 input columns from torch's NCHW flatten (c,h,w) to our (h,c,w)
    w1p = jnp.transpose(w1.reshape(hidden, Cf, Hf, Wf), (0, 2, 1, 3)).reshape(hidden, -1)
    pp["w1T"] = w1p.T
    pp["b1"] = b1[None, :]
    w2, b2 = params["fc2"]
    pp["w2T"] = w2.T
    pp["b2"] = b2[None, :]
    wc, bc = params["cls"]
    pp["wclT"] = wc.T
    pp["bcl"] = bc[None, :]
    pp["wdirT"] = params["dir"].T
    pp["wnrm"] = params["norm"]
    return pp


# ----------------------------------------------------------------------------
# Forward: one pallas_call for the whole model
# ----------------------------------------------------------------------------
def poincare_emb_vgg_forward(x_nchw, pp):
    N, C0, H0, W0 = x_nchw.shape
    x3 = x_nchw.reshape(N * C0, H0, W0)       # free, row-major-compatible reshape

    # static per-stage dims, derived from (static) array shapes
    dims = []
    H, W, Cin = H0, W0, C0
    for wrow in pp["wrow"]:
        Cout = wrow.shape[2] // W
        dims.append((H, W, Cin, Cout))
        H, W, Cin = H // 2, W // 2, Cout
    n_emb = pp["wclT"].shape[1]

    args = [x3]
    for s in range(len(dims)):
        args += [pp["wrow"][s], pp["brow"][s], pp["srow"][s], pp["scol"][s]]
    args += [pp["w1T"], pp["b1"], pp["w2T"], pp["b2"],
             pp["wclT"], pp["bcl"], pp["wdirT"], pp["wnrm"]]

    kernel = functools.partial(_fused_kernel, N=N, C0=C0, dims=tuple(dims))
    return pl.pallas_call(
        kernel,
        out_shape=jax.ShapeDtypeStruct((N, n_emb), jnp.float32),
    )(*args)


# ----------------------------------------------------------------------------
if __name__ == "__main__":
    key = jax.random.PRNGKey(0)
    k_x, k_p = jax.random.split(key)

    batch, in_ch, spatial = 2, 3, 16
    n_emb_dims = 8
    x = jax.random.normal(k_x, (batch, in_ch, spatial, spatial), jnp.float32)

    params = init_params(k_p, in_ch=in_ch, spatial=spatial,
                         hidden=32, n_emb_dims=n_emb_dims)
    # one-time weight preprocessing (hoisted out of the jitted forward)
    pp = prepare_params(params, in_ch=in_ch, spatial=spatial)

    fwd = jax.jit(poincare_emb_vgg_forward)
    y = jax.block_until_ready(fwd(x, pp))
    assert y.shape == (batch, n_emb_dims), y.shape
    assert bool(jnp.all(jnp.isfinite(y)))
    print("KERNEL_OK")
</pallas_src>

<mosaic_0001>
module attributes {stable_mosaic.version = 11 : i64} {
  func.func @_fused_kernel(%arg0: memref<6x16x16xf32, #tpu.memory_space<vmem>>, %arg1: memref<3x48x128xbf16, #tpu.memory_space<vmem>>, %arg2: memref<1x128xf32, #tpu.memory_space<vmem>>, %arg3: memref<8x15xf32, #tpu.memory_space<vmem>>, %arg4: memref<127x64xf32, #tpu.memory_space<vmem>>, %arg5: memref<3x64x128xbf16, #tpu.memory_space<vmem>>, %arg6: memref<1x128xf32, #tpu.memory_space<vmem>>, %arg7: memref<4x7xf32, #tpu.memory_space<vmem>>, %arg8: memref<127x64xf32, #tpu.memory_space<vmem>>, %arg9: memref<3x64x64xbf16, #tpu.memory_space<vmem>>, %arg10: memref<1x64xf32, #tpu.memory_space<vmem>>, %arg11: memref<2x3xf32, #tpu.memory_space<vmem>>, %arg12: memref<63x32xf32, #tpu.memory_space<vmem>>, %arg13: memref<64x32xf32, #tpu.memory_space<vmem>>, %arg14: memref<1x32xf32, #tpu.memory_space<vmem>>, %arg15: memref<32x32xf32, #tpu.memory_space<vmem>>, %arg16: memref<1x32xf32, #tpu.memory_space<vmem>>, %arg17: memref<32x8xf32, #tpu.memory_space<vmem>>, %arg18: memref<1x8xf32, #tpu.memory_space<vmem>>, %arg19: memref<8x8xf32, #tpu.memory_space<vmem>>, %arg20: memref<1x8xf32, #tpu.memory_space<vmem>>, %arg21: memref<2x8xf32, #tpu.memory_space<vmem>>) attributes {dimension_semantics = [], scalar_prefetch = 0 : i64, scratch_operands = 0 : i64, tpu.core_type = #tpu.core_type<tc>} {
    %cst = arith.constant 0.000000e+00 : f32
    %0 = vector.broadcast %cst : f32 to vector<1x48xf32>
    %c0 = arith.constant 0 : index
    %c0_0 = arith.constant 0 : index
    %c0_1 = arith.constant 0 : index
    %1 = vector.load %arg0[%c0, %c0_0, %c0_1] : memref<6x16x16xf32, #tpu.memory_space<vmem>>, vector<1x16x16xf32>
    %2 = vector.shape_cast %1 : vector<1x16x16xf32> to vector<16x16xf32>
    %c1 = arith.constant 1 : index
    %c0_2 = arith.constant 0 : index
    %c0_3 = arith.constant 0 : index
    %3 = vector.load %arg0[%c1, %c0_2, %c0_3] : memref<6x16x16xf32, #tpu.memory_space<vmem>>, vector<1x16x16xf32>
    %4 = vector.shape_cast %3 : vector<1x16x16xf32> to vector<16x16xf32>
    %c2 = arith.constant 2 : index
    %c0_4 = arith.constant 0 : index
    %c0_5 = arith.constant 0 : index
    %5 = vector.load %arg0[%c2, %c0_4, %c0_5] : memref<6x16x16xf32, #tpu.memory_space<vmem>>, vector<1x16x16xf32>
    %6 = vector.shape_cast %5 : vector<1x16x16xf32> to vector<16x16xf32>
    %7 = tpu.concatenate %2, %4, %6 in 1 : vector<16x16xf32>, vector<16x16xf32>, vector<16x16xf32> -> vector<16x48xf32>
    %c3 = arith.constant 3 : index
    %c0_6 = arith.constant 0 : index
    %c0_7 = arith.constant 0 : index
    %8 = vector.load %arg0[%c3, %c0_6, %c0_7] : memref<6x16x16xf32, #tpu.memory_space<vmem>>, vector<1x16x16xf32>
    %9 = vector.shape_cast %8 : vector<1x16x16xf32> to vector<16x16xf32>
    %c4 = arith.constant 4 : index
    %c0_8 = arith.constant 0 : index
    %c0_9 = arith.constant 0 : index
    %10 = vector.load %arg0[%c4, %c0_8, %c0_9] : memref<6x16x16xf32, #tpu.memory_space<vmem>>, vector<1x16x16xf32>
    %11 = vector.shape_cast %10 : vector<1x16x16xf32> to vector<16x16xf32>
    %c5 = arith.constant 5 : index
    %c0_10 = arith.constant 0 : index
    %c0_11 = arith.constant 0 : index
    %12 = vector.load %arg0[%c5, %c0_10, %c0_11] : memref<6x16x16xf32, #tpu.memory_space<vmem>>, vector<1x16x16xf32>
    %13 = vector.shape_cast %12 : vector<1x16x16xf32> to vector<16x16xf32>
    %14 = tpu.concatenate %9, %11, %13 in 1 : vector<16x16xf32>, vector<16x16xf32>, vector<16x16xf32> -> vector<16x48xf32>
    %15 = tpu.concatenate %0, %7, %0, %0, %14, %0 in 0 : vector<1x48xf32>, vector<16x48xf32>, vector<1x48xf32>, vector<1x48xf32>, vector<16x48xf32>, vector<1x48xf32> -> vector<36x48xf32>
    %16 = arith.truncf %15 : vector<36x48xf32> to vector<36x48xbf16>
    %c0_12 = arith.constant 0 : index
    %c0_13 = arith.constant 0 : index
    %c0_14 = arith.constant 0 : index
    %17 = vector.load %arg1[%c0_12, %c0_13, %c0_14] : memref<3x48x128xbf16, #tpu.memory_space<vmem>>, vector<1x48x128xbf16>
    %18 = vector.shape_cast %17 : vector<1x48x128xbf16> to vector<48x128xbf16>
    %cst_15 = arith.constant dense<0.000000e+00> : vector<36x128xf32>
    %19 = tpu.matmul %16, %18, %cst_15 {dimension_numbers = #tpu.dot_dimension_numbers<[1], [0], [0], [1], [0, 0, 1, 1], [], []>} : vector<36x48xbf16>, vector<48x128xbf16>, vector<36x128xf32> -> vector<36x128xf32>
    %c1_16 = arith.constant 1 : index
    %c0_17 = arith.constant 0 : index
    %c0_18 = arith.constant 0 : index
    %20 = vector.load %arg1[%c1_16, %c0_17, %c0_18] : memref<3x48x128xbf16, #tpu.memory_space<vmem>>, vector<1x48x128xbf16>
    %21 = vector.shape_cast %20 : vector<1x48x128xbf16> to vector<48x128xbf16>
    %cst_19 = arith.constant dense<0.000000e+00> : vector<36x128xf32>
    %22 = tpu.matmul %16, %21, %cst_19 {dimension_numbers = #tpu.dot_dimension_numbers<[1], [0], [0], [1], [0, 0, 1, 1], [], []>} : vector<36x48xbf16>, vector<48x128xbf16>, vector<36x128xf32> -> vector<36x128xf32>
    %c2_20 = arith.constant 2 : index
    %c0_21 = arith.constant 0 : index
    %c0_22 = arith.constant 0 : index
    %23 = vector.load %arg1[%c2_20, %c0_21, %c0_22] : memref<3x48x128xbf16, #tpu.memory_space<vmem>>, vector<1x48x128xbf16>
    %24 = vector.shape_cast %23 : vector<1x48x128xbf16> to vector<48x128xbf16>
    %cst_23 = arith.constant dense<0.000000e+00> : vector<36x128xf32>
    %25 = tpu.matmul %16, %24, %cst_23 {dimension_numbers = #tpu.dot_dimension_numbers<[1], [0], [0], [1], [0, 0, 1, 1], [], []>} : vector<36x48xbf16>, vector<48x128xbf16>, vector<36x128xf32> -> vector<36x128xf32>
    %26 = vector.extract_strided_slice %19 {offsets = [0, 0], sizes = [34, 128], strides = [1, 1]} : vector<36x128xf32> to vector<34x128xf32>
    %27 = vector.extract_strided_slice %22 {offsets = [1, 0], sizes = [34, 128], strides = [1, 1]} : vector<36x128xf32> to vector<34x128xf32>
    %28 = arith.addf %26, %27 : vector<34x128xf32>
    %29 = vector.extract_strided_slice %25 {offsets = [2, 0], sizes = [34, 128], strides = [1, 1]} : vector<36x128xf32> to vector<34x128xf32>
    %30 = arith.addf %28, %29 : vector<34x128xf32>
    %c0_24 = arith.constant 0 : index
    %c0_25 = arith.constant 0 : index
    %31 = vector.load %arg2[%c0_24, %c0_25] : memref<1x128xf32, #tpu.memory_space<vmem>>, vector<1x128xf32>
    %32 = vector.broadcast %31 : vector<1x128xf32> to vector<34x128xf32>
    %33 = arith.addf %30, %32 : vector<34x128xf32>
    %cst_26 = arith.constant 0.000000e+00 : f32
    %34 = vector.broadcast %cst_26 : f32 to vector<34x128xf32>
    %35 = arith.maximumf %33, %34 : vector<34x128xf32>
    %36 = vector.extract_strided_slice %35 {offsets = [0, 0], sizes = [33, 128], strides = [1, 1]} : vector<34x128xf32> to vector<33x128xf32>
    %37 = vector.extract_strided_slice %35 {offsets = [1, 0], sizes = [33, 128], strides = [1, 1]} : vector<34x128xf32> to vector<33x128xf32>
    %38 = arith.maximumf %36, %37 : vector<33x128xf32>
    %39 = vector.extract_strided_slice %38 {offsets = [0, 0], sizes = [33, 127], strides = [1, 1]} : vector<33x128xf32> to vector<33x127xf32>
    %40 = vector.extract_strided_slice %38 {offsets = [0, 1], sizes = [33, 127], strides = [1, 1]} : vector<33x128xf32> to vector<33x127xf32>
    %41 = arith.maximumf %39, %40 : vector<33x127xf32>
    %c0_27 = arith.constant 0 : index
    %c0_28 = arith.constant 0 : index
    %42 = vector.load %arg4[%c0_27, %c0_28] : memref<127x64xf32, #tpu.memory_space<vmem>>, vector<127x64xf32>
    %cst_29 = arith.constant dense<0.000000e+00> : vector<33x64xf32>
    %43 = tpu.matmul %41, %42, %cst_29 {dimension_numbers = #tpu.dot_dimension_numbers<[1], [0], [0], [1], [0, 0, 1, 1], [], []>} : vector<33x127xf32>, vector<127x64xf32>, vector<33x64xf32> -> vector<33x64xf32>
    %44 = vector.extract_strided_slice %43 {offsets = [0, 0], sizes = [15, 64], strides = [1, 1]} : vector<33x64xf32> to vector<15x64xf32>
    %c0_30 = arith.constant 0 : index
    %c0_31 = arith.constant 0 : index
    %45 = vector.load %arg3[%c0_30, %c0_31] : memref<8x15xf32, #tpu.memory_space<vmem>>, vector<8x15xf32>
    %cst_32 = arith.constant dense<0.000000e+00> : vector<8x64xf32>
    %46 = tpu.matmul %45, %44, %cst_32 {dimension_numbers = #tpu.dot_dimension_numbers<[1], [0], [0], [1], [0, 0, 1, 1], [], []>} : vector<8x15xf32>, vector<15x64xf32>, vector<8x64xf32> -> vector<8x64xf32>
    %47 = vector.extract_strided_slice %43 {offsets = [18, 0], sizes = [15, 64], strides = [1, 1]} : vector<33x64xf32> to vector<15x64xf32>
    %c0_33 = arith.constant 0 : index
    %c0_34 = arith.constant 0 : index
    %48 = vector.load %arg3[%c0_33, %c0_34] : memref<8x15xf32, #tpu.memory_space<vmem>>, vector<8x15xf32>
    %cst_35 = arith.constant dense<0.000000e+00> : vector<8x64xf32>
    %49 = tpu.matmul %48, %47, %cst_35 {dimension_numbers = #tpu.dot_dimension_numbers<[1], [0], [0], [1], [0, 0, 1, 1], [], []>} : vector<8x15xf32>, vector<15x64xf32>, vector<8x64xf32> -> vector<8x64xf32>
    %cst_36 = arith.constant 0.000000e+00 : f32
    %50 = vector.broadcast %cst_36 : f32 to vector<1x64xf32>
    %51 = tpu.concatenate %50, %46, %50, %50, %49, %50 in 0 : vector<1x64xf32>, vector<8x64xf32>, vector<1x64xf32>, vector<1x64xf32>, vector<8x64xf32>, vector<1x64xf32> -> vector<20x64xf32>
    %52 = arith.truncf %51 : vector<20x64xf32> to vector<20x64xbf16>
    %c0_37 = arith.constant 0 : index
    %c0_38 = arith.constant 0 : index
    %c0_39 = arith.constant 0 : index
    %53 = vector.load %arg5[%c0_37, %c0_38, %c0_39] : memref<3x64x128xbf16, #tpu.memory_space<vmem>>, vector<1x64x128xbf16>
    %54 = vector.shape_cast %53 : vector<1x64x128xbf16> to vector<64x128xbf16>
    %cst_40 = arith.constant dense<0.000000e+00> : vector<20x128xf32>
    %55 = tpu.matmul %52, %54, %cst_40 {dimension_numbers = #tpu.dot_dimension_numbers<[1], [0], [0], [1], [0, 0, 1, 1], [], []>} : vector<20x64xbf16>, vector<64x128xbf16>, vector<20x128xf32> -> vector<20x128xf32>
    %c1_41 = arith.constant 1 : index
    %c0_42 = arith.constant 0 : index
    %c0_43 = arith.constant 0 : index
    %56 = vector.load %arg5[%c1_41, %c0_42, %c0_43] : memref<3x64x128xbf16, #tpu.memory_space<vmem>>, vector<1x64x128xbf16>
    %57 = vector.shape_cast %56 : vector<1x64x128xbf16> to vector<64x128xbf16>
    %cst_44 = arith.constant dense<0.000000e+00> : vector<20x128xf32>
    %58 = tpu.matmul %52, %57, %cst_44 {dimension_numbers = #tpu.dot_dimension_numbers<[1], [0], [0], [1], [0, 0, 1, 1], [], []>} : vector<20x64xbf16>, vector<64x128xbf16>, vector<20x128xf32> -> vector<20x128xf32>
    %c2_45 = arith.constant 2 : index
    %c0_46 = arith.constant 0 : index
    %c0_47 = arith.constant 0 : index
    %59 = vector.load %arg5[%c2_45, %c0_46, %c0_47] : memref<3x64x128xbf16, #tpu.memory_space<vmem>>, vector<1x64x128xbf16>
    %60 = vector.shape_cast %59 : vector<1x64x128xbf16> to vector<64x128xbf16>
    %cst_48 = arith.constant dense<0.000000e+00> : vector<20x128xf32>
    %61 = tpu.matmul %52, %60, %cst_48 {dimension_numbers = #tpu.dot_dimension_numbers<[1], [0], [0], [1], [0, 0, 1, 1], [], []>} : vector<20x64xbf16>, vector<64x128xbf16>, vector<20x128xf32> -> vector<20x128xf32>
    %62 = vector.extract_strided_slice %55 {offsets = [0, 0], sizes = [18, 128], strides = [1, 1]} : vector<20x128xf32> to vector<18x128xf32>
    %63 = vector.extract_strided_slice %58 {offsets = [1, 0], sizes = [18, 128], strides = [1, 1]} : vector<20x128xf32> to vector<18x128xf32>
    %64 = arith.addf %62, %63 : vector<18x128xf32>
    %65 = vector.extract_strided_slice %61 {offsets = [2, 0], sizes = [18, 128], strides = [1, 1]} : vector<20x128xf32> to vector<18x128xf32>
    %66 = arith.addf %64, %65 : vector<18x128xf32>
    %c0_49 = arith.constant 0 : index
    %c0_50 = arith.constant 0 : index
    %67 = vector.load %arg6[%c0_49, %c0_50] : memref<1x128xf32, #tpu.memory_space<vmem>>, vector<1x128xf32>
    %68 = vector.broadcast %67 : vector<1x128xf32> to vector<18x128xf32>
    %69 = arith.addf %66, %68 : vector<18x128xf32>
    %cst_51 = arith.constant 0.000000e+00 : f32
    %70 = vector.broadcast %cst_51 : f32 to vector<18x128xf32>
    %71 = arith.maximumf %69, %70 : vector<18x128xf32>
    %72 = vector.extract_strided_slice %71 {offsets = [0, 0], sizes = [17, 128], strides = [1, 1]} : vector<18x128xf32> to vector<17x128xf32>
    %73 = vector.extract_strided_slice %71 {offsets = [1, 0], sizes = [17, 128], strides = [1, 1]} : vector<18x128xf32> to vector<17x128xf32>
    %74 = arith.maximumf %72, %73 : vector<17x128xf32>
    %75 = vector.extract_strided_slice %74 {offsets = [0, 0], sizes = [17, 127], strides = [1, 1]} : vector<17x128xf32> to vector<17x127xf32>
    %76 = vector.extract_strided_slice %74 {offsets = [0, 1], sizes = [17, 127], strides = [1, 1]} : vector<17x128xf32> to vector<17x127xf32>
    %77 = arith.maximumf %75, %76 : vector<17x127xf32>
    %c0_52 = arith.constant 0 : index
    %c0_53 = arith.constant 0 : index
    %78 = vector.load %arg8[%c0_52, %c0_53] : memref<127x64xf32, #tpu.memory_space<vmem>>, vector<127x64xf32>
    %cst_54 = arith.constant dense<0.000000e+00> : vector<17x64xf32>
    %79 = tpu.matmul %77, %78, %cst_54 {dimension_numbers = #tpu.dot_dimension_numbers<[1], [0], [0], [1], [0, 0, 1, 1], [], []>} : vector<17x127xf32>, vector<127x64xf32>, vector<17x64xf32> -> vector<17x64xf32>
    %80 = vector.extract_strided_slice %79 {offsets = [0, 0], sizes = [7, 64], strides = [1, 1]} : vector<17x64xf32> to vector<7x64xf32>
    %c0_55 = arith.constant 0 : index
    %c0_56 = arith.constant 0 : index
    %81 = vector.load %arg7[%c0_55, %c0_56] : memref<4x7xf32, #tpu.memory_space<vmem>>, vector<4x7xf32>
    %cst_57 = arith.constant dense<0.000000e+00> : vector<4x64xf32>
    %82 = tpu.matmul %81, %80, %cst_57 {dimension_numbers = #tpu.dot_dimension_numbers<[1], [0], [0], [1], [0, 0, 1, 1], [], []>} : vector<4x7xf32>, vector<7x64xf32>, vector<4x64xf32> -> vector<4x64xf32>
    %83 = vector.extract_strided_slice %79 {offsets = [10, 0], sizes = [7, 64], strides = [1, 1]} : vector<17x64xf32> to vector<7x64xf32>
    %c0_58 = arith.constant 0 : index
    %c0_59 = arith.constant 0 : index
    %84 = vector.load %arg7[%c0_58, %c0_59] : memref<4x7xf32, #tpu.memory_space<vmem>>, vector<4x7xf32>
    %cst_60 = arith.constant dense<0.000000e+00> : vector<4x64xf32>
    %85 = tpu.matmul %84, %83, %cst_60 {dimension_numbers = #tpu.dot_dimension_numbers<[1], [0], [0], [1], [0, 0, 1, 1], [], []>} : vector<4x7xf32>, vector<7x64xf32>, vector<4x64xf32> -> vector<4x64xf32>
    %cst_61 = arith.constant 0.000000e+00 : f32
    %86 = vector.broadcast %cst_61 : f32 to vector<1x64xf32>
    %87 = tpu.concatenate %86, %82, %86, %86, %85, %86 in 0 : vector<1x64xf32>, vector<4x64xf32>, vector<1x64xf32>, vector<1x64xf32>, vector<4x64xf32>, vector<1x64xf32> -> vector<12x64xf32>
    %88 = arith.truncf %87 : vector<12x64xf32> to vector<12x64xbf16>
    %c0_62 = arith.constant 0 : index
    %c0_63 = arith.constant 0 : index
    %c0_64 = arith.constant 0 : index
    %89 = vector.load %arg9[%c0_62, %c0_63, %c0_64] : memref<3x64x64xbf16, #tpu.memory_space<vmem>>, vector<1x64x64xbf16>
    %90 = vector.shape_cast %89 : vector<1x64x64xbf16> to vector<64x64xbf16>
    %cst_65 = arith.constant dense<0.000000e+00> : vector<12x64xf32>
    %91 = tpu.matmul %88, %90, %cst_65 {dimension_numbers = #tpu.dot_dimension_numbers<[1], [0], [0], [1], [0, 0, 1, 1], [], []>} : vector<12x64xbf16>, vector<64x64xbf16>, vector<12x64xf32> -> vector<12x64xf32>
    %c1_66 = arith.constant 1 : index
    %c0_67 = arith.constant 0 : index
    %c0_68 = arith.constant 0 : index
    %92 = vector.load %arg9[%c1_66, %c0_67, %c0_68] : memref<3x64x64xbf16, #tpu.memory_space<vmem>>, vector<1x64x64xbf16>
    %93 = vector.shape_cast %92 : vector<1x64x64xbf16> to vector<64x64xbf16>
    %cst_69 = arith.constant dense<0.000000e+00> : vector<12x64xf32>
    %94 = tpu.matmul %88, %93, %cst_69 {dimension_numbers = #tpu.dot_dimension_numbers<[1], [0], [0], [1], [0, 0, 1, 1], [], []>} : vector<12x64xbf16>, vector<64x64xbf16>, vector<12x64xf32> -> vector<12x64xf32>
    %c2_70 = arith.constant 2 : index
    %c0_71 = arith.constant 0 : index
    %c0_72 = arith.constant 0 : index
    %95 = vector.load %arg9[%c2_70, %c0_71, %c0_72] : memref<3x64x64xbf16, #tpu.memory_space<vmem>>, vector<1x64x64xbf16>
    %96 = vector.shape_cast %95 : vector<1x64x64xbf16> to vector<64x64xbf16>
    %cst_73 = arith.constant dense<0.000000e+00> : vector<12x64xf32>
    %97 = tpu.matmul %88, %96, %cst_73 {dimension_numbers = #tpu.dot_dimension_numbers<[1], [0], [0], [1], [0, 0, 1, 1], [], []>} : vector<12x64xbf16>, vector<64x64xbf16>, vector<12x64xf32> -> vector<12x64xf32>
    %98 = vector.extract_strided_slice %91 {offsets = [0, 0], sizes = [10, 64], strides = [1, 1]} : vector<12x64xf32> to vector<10x64xf32>
    %99 = vector.extract_strided_slice %94 {offsets = [1, 0], sizes = [10, 64], strides = [1, 1]} : vector<12x64xf32> to vector<10x64xf32>
    %100 = arith.addf %98, %99 : vector<10x64xf32>
    %101 = vector.extract_strided_slice %97 {offsets = [2, 0], sizes = [10, 64], strides = [1, 1]} : vector<12x64xf32> to vector<10x64xf32>
    %102 = arith.addf %100, %101 : vector<10x64xf32>
    %c0_74 = arith.constant 0 : index
    %c0_75 = arith.constant 0 : index
    %103 = vector.load %arg10[%c0_74, %c0_75] : memref<1x64xf32, #tpu.memory_space<vmem>>, vector<1x64xf32>
    %104 = vector.broadcast %103 : vector<1x64xf32> to vector<10x64xf32>
    %105 = arith.addf %102, %104 : vector<10x64xf32>
    %cst_76 = arith.constant 0.000000e+00 : f32
    %106 = vector.broadcast %cst_76 : f32 to vector<10x64xf32>
    %107 = arith.maximumf %105, %106 : vector<10x64xf32>
    %108 = vector.extract_strided_slice %107 {offsets = [0, 0], sizes = [9, 64], strides = [1, 1]} : vector<10x64xf32> to vector<9x64xf32>
    %109 = vector.extract_strided_slice %107 {offsets = [1, 0], sizes = [9, 64], strides = [1, 1]} : vector<10x64xf32> to vector<9x64xf32>
    %110 = arith.maximumf %108, %109 : vector<9x64xf32>
    %111 = vector.extract_strided_slice %110 {offsets = [0, 0], sizes = [9, 63], strides = [1, 1]} : vector<9x64xf32> to vector<9x63xf32>
    %112 = vector.extract_strided_slice %110 {offsets = [0, 1], sizes = [9, 63], strides = [1, 1]} : vector<9x64xf32> to vector<9x63xf32>
    %113 = arith.maximumf %111, %112 : vector<9x63xf32>
    %c0_77 = arith.constant 0 : index
    %c0_78 = arith.constant 0 : index
    %114 = vector.load %arg12[%c0_77, %c0_78] : memref<63x32xf32, #tpu.memory_space<vmem>>, vector<63x32xf32>
    %cst_79 = arith.constant dense<0.000000e+00> : vector<9x32xf32>
    %115 = tpu.matmul %113, %114, %cst_79 {dimension_numbers = #tpu.dot_dimension_numbers<[1], [0], [0], [1], [0, 0, 1, 1], [], []>} : vector<9x63xf32>, vector<63x32xf32>, vector<9x32xf32> -> vector<9x32xf32>
    %116 = vector.extract_strided_slice %115 {offsets = [0, 0], sizes = [3, 32], strides = [1, 1]} : vector<9x32xf32> to vector<3x32xf32>
    %c0_80 = arith.constant 0 : index
    %c0_81 = arith.constant 0 : index
    %117 = vector.load %arg11[%c0_80, %c0_81] : memref<2x3xf32, #tpu.memory_space<vmem>>, vector<2x3xf32>
    %cst_82 = arith.constant dense<0.000000e+00> : vector<2x32xf32>
    %118 = tpu.matmul %117, %116, %cst_82 {dimension_numbers = #tpu.dot_dimension_numbers<[1], [0], [0], [1], [0, 0, 1, 1], [], []>} : vector<2x3xf32>, vector<3x32xf32>, vector<2x32xf32> -> vector<2x32xf32>
    %119 = vector.extract_strided_slice %115 {offsets = [6, 0], sizes = [3, 32], strides = [1, 1]} : vector<9x32xf32> to vector<3x32xf32>
    %c0_83 = arith.constant 0 : index
    %c0_84 = arith.constant 0 : index
    %120 = vector.load %arg11[%c0_83, %c0_84] : memref<2x3xf32, #tpu.memory_space<vmem>>, vector<2x3xf32>
    %cst_85 = arith.constant dense<0.000000e+00> : vector<2x32xf32>
    %121 = tpu.matmul %120, %119, %cst_85 {dimension_numbers = #tpu.dot_dimension_numbers<[1], [0], [0], [1], [0, 0, 1, 1], [], []>} : vector<2x3xf32>, vector<3x32xf32>, vector<2x32xf32> -> vector<2x32xf32>
    %122 = vector.extract_strided_slice %118 {offsets = [0, 0], sizes = [1, 32], strides = [1, 1]} : vector<2x32xf32> to vector<1x32xf32>
    %123 = vector.extract_strided_slice %118 {offsets = [1, 0], sizes = [1, 32], strides = [1, 1]} : vector<2x32xf32> to vector<1x32xf32>
    %124 = tpu.concatenate %122, %123 in 1 : vector<1x32xf32>, vector<1x32xf32> -> vector<1x64xf32>
    %125 = vector.extract_strided_slice %121 {offsets = [0, 0], sizes = [1, 32], strides = [1, 1]} : vector<2x32xf32> to vector<1x32xf32>
    %126 = vector.extract_strided_slice %121 {offsets = [1, 0], sizes = [1, 32], strides = [1, 1]} : vector<2x32xf32> to vector<1x32xf32>
    %127 = tpu.concatenate %125, %126 in 1 : vector<1x32xf32>, vector<1x32xf32> -> vector<1x64xf32>
    %128 = tpu.concatenate %124, %127 in 0 : vector<1x64xf32>, vector<1x64xf32> -> vector<2x64xf32>
    %c0_86 = arith.constant 0 : index
    %c0_87 = arith.constant 0 : index
    %129 = vector.load %arg13[%c0_86, %c0_87] : memref<64x32xf32, #tpu.memory_space<vmem>>, vector<64x32xf32>
    %cst_88 = arith.constant dense<0.000000e+00> : vector<2x32xf32>
    %130 = tpu.matmul %128, %129, %cst_88 {dimension_numbers = #tpu.dot_dimension_numbers<[1], [0], [0], [1], [0, 0, 1, 1], [], []>} : vector<2x64xf32>, vector<64x32xf32>, vector<2x32xf32> -> vector<2x32xf32>
    %c0_89 = arith.constant 0 : index
    %c0_90 = arith.constant 0 : index
    %131 = vector.load %arg14[%c0_89, %c0_90] : memref<1x32xf32, #tpu.memory_space<vmem>>, vector<1x32xf32>
    %132 = vector.broadcast %131 : vector<1x32xf32> to vector<2x32xf32>
    %133 = arith.addf %130, %132 : vector<2x32xf32>
    %cst_91 = arith.constant 0.000000e+00 : f32
    %134 = vector.broadcast %cst_91 : f32 to vector<2x32xf32>
    %135 = arith.maximumf %133, %134 : vector<2x32xf32>
    %c0_92 = arith.constant 0 : index
    %c0_93 = arith.constant 0 : index
    %136 = vector.load %arg15[%c0_92, %c0_93] : memref<32x32xf32, #tpu.memory_space<vmem>>, vector<32x32xf32>
    %cst_94 = arith.constant dense<0.000000e+00> : vector<2x32xf32>
    %137 = tpu.matmul %135, %136, %cst_94 {dimension_numbers = #tpu.dot_dimension_numbers<[1], [0], [0], [1], [0, 0, 1, 1], [], []>} : vector<2x32xf32>, vector<32x32xf32>, vector<2x32xf32> -> vector<2x32xf32>
    %c0_95 = arith.constant 0 : index
    %c0_96 = arith.constant 0 : index
    %138 = vector.load %arg16[%c0_95, %c0_96] : memref<1x32xf32, #tpu.memory_space<vmem>>, vector<1x32xf32>
    %139 = vector.broadcast %138 : vector<1x32xf32> to vector<2x32xf32>
    %140 = arith.addf %137, %139 : vector<2x32xf32>
    %cst_97 = arith.constant 0.000000e+00 : f32
    %141 = vector.broadcast %cst_97 : f32 to vector<2x32xf32>
    %142 = arith.maximumf %140, %141 : vector<2x32xf32>
    %c0_98 = arith.constant 0 : index
    %c0_99 = arith.constant 0 : index
    %143 = vector.load %arg17[%c0_98, %c0_99] : memref<32x8xf32, #tpu.memory_space<vmem>>, vector<32x8xf32>
    %cst_100 = arith.constant dense<0.000000e+00> : vector<2x8xf32>
    %144 = tpu.matmul %142, %143, %cst_100 {dimension_numbers = #tpu.dot_dimension_numbers<[1], [0], [0], [1], [0, 0, 1, 1], [], []>} : vector<2x32xf32>, vector<32x8xf32>, vector<2x8xf32> -> vector<2x8xf32>
    %c0_101 = arith.constant 0 : index
    %c0_102 = arith.constant 0 : index
    %145 = vector.load %arg18[%c0_101, %c0_102] : memref<1x8xf32, #tpu.memory_space<vmem>>, vector<1x8xf32>
    %146 = vector.broadcast %145 : vector<1x8xf32> to vector<2x8xf32>
    %147 = arith.addf %144, %146 : vector<2x8xf32>
    %c0_103 = arith.constant 0 : index
    %c0_104 = arith.constant 0 : index
    %148 = vector.load %arg19[%c0_103, %c0_104] : memref<8x8xf32, #tpu.memory_space<vmem>>, vector<8x8xf32>
    %cst_105 = arith.constant dense<0.000000e+00> : vector<2x8xf32>
    %149 = tpu.matmul %147, %148, %cst_105 {dimension_numbers = #tpu.dot_dimension_numbers<[1], [0], [0], [1], [0, 0, 1, 1], [], []>} : vector<2x8xf32>, vector<8x8xf32>, vector<2x8xf32> -> vector<2x8xf32>
    %c0_106 = arith.constant 0 : index
    %c0_107 = arith.constant 0 : index
    %150 = vector.load %arg20[%c0_106, %c0_107] : memref<1x8xf32, #tpu.memory_space<vmem>>, vector<1x8xf32>
    %151 = vector.broadcast %150 : vector<1x8xf32> to vector<2x8xf32>
    %152 = arith.mulf %147, %151 : vector<2x8xf32>
    %cst_108 = arith.constant dense<0.000000e+00> : vector<2xf32>
    %153 = vector.multi_reduction <add>, %152, %cst_108 [1] : vector<2x8xf32> to vector<2xf32>
    %154 = vector.shape_cast %153 : vector<2xf32> to vector<2x1xf32>
    %155 = arith.mulf %149, %149 : vector<2x8xf32>
    %cst_109 = arith.constant dense<0.000000e+00> : vector<2xf32>
    %156 = vector.multi_reduction <add>, %155, %cst_109 [1] : vector<2x8xf32> to vector<2xf32>
    %157 = vector.shape_cast %156 : vector<2xf32> to vector<2x1xf32>
    %cst_110 = arith.constant 9.99999996E-13 : f32
    %158 = vector.broadcast %cst_110 : f32 to vector<2x1xf32>
    %159 = arith.addf %157, %158 : vector<2x1xf32>
    %160 = math.rsqrt %159 : vector<2x1xf32>
    %161 = vector.broadcast %160 : vector<2x1xf32> to vector<2x8xf32>
    %162 = arith.mulf %149, %161 : vector<2x8xf32>
    %cst_111 = arith.constant 0.000000e+00 : f32
    %163 = vector.broadcast %cst_111 : f32 to vector<2x1xf32>
    %164 = arith.subf %163, %154 : vector<2x1xf32>
    %165 = math.exp %164 : vector<2x1xf32>
    %cst_112 = arith.constant 1.000000e+00 : f32
    %166 = vector.broadcast %cst_112 : f32 to vector<2x1xf32>
    %167 = arith.addf %166, %165 : vector<2x1xf32>
    %168 = tpu.reciprocal %167 {approx = true} : vector<2x1xf32> -> vector<2x1xf32>
    %169 = vector.broadcast %168 : vector<2x1xf32> to vector<2x8xf32>
    %170 = arith.mulf %169, %162 : vector<2x8xf32>
    %c0_113 = arith.constant 0 : index
    %c0_114 = arith.constant 0 : index
    %171 = vector.load %arg21[%c0_113, %c0_114] : memref<2x8xf32, #tpu.memory_space<vmem>>, vector<2x8xf32>
    tpu.vector_store %arg21[%c0_113, %c0_114], %170 {strides = array<i32>} : memref<2x8xf32, #tpu.memory_space<vmem>>, vector<2x8xf32>,
    return
  }
}

</mosaic_0001>

<bundles_post_ra>
// kernel: poincare_emb_vgg_forward.1
= control target key start
LH: loop header
LB: loop body
LE: loop exit
PB: predicated region body
PF: predicated region fallthrough
CT: control target
= control target key end

     0   :  { %s2278_s0 = inlined_call_operand.vmem [shape: f32[6,16,16], index: 0, kind: input, shape index: {}]   ;;  %s2279_s1 = inlined_call_operand.vmem [shape: bf16[3,48,128], index: 1, kind: input, shape index: {}]   ;;  %s2280_s2 = inlined_call_operand.vmem [shape: f32[1,128], index: 2, kind: input, shape index: {}]   ;;  %s2281_s3 = inlined_call_operand.vmem [shape: f32[8,15], index: 3, kind: input, shape index: {}]   ;;  %s2282_s4 = inlined_call_operand.vmem [shape: f32[127,64], index: 4, kind: input, shape index: {}]   ;;  %s2283_s5 = inlined_call_operand.vmem [shape: bf16[3,64,128], index: 5, kind: input, shape index: {}]   ;;  %s2284_s6 = inlined_call_operand.vmem [shape: f32[1,128], index: 6, kind: input, shape index: {}]   ;;  %s2285_s7 = inlined_call_operand.vmem [shape: f32[4,7], index: 7, kind: input, shape index: {}]   ;;  %s2286_s8 = inlined_call_operand.vmem [shape: f32[127,64], index: 8, kind: input, shape index: {}]   ;;  %s2287_s9 = inlined_call_operand.vmem [shape: bf16[3,64,64], index: 9, kind: input, shape index: {}]   ;;  %s2288_s10 = inlined_call_operand.vmem [shape: f32[1,64], index: 10, kind: input, shape index: {}]   ;;  %s2289_s11 = inlined_call_operand.vmem [shape: f32[2,3], index: 11, kind: input, shape index: {}]   ;;  %s2290_s12 = inlined_call_operand.vmem [shape: f32[63,32], index: 12, kind: input, shape index: {}]   ;;  %s2291_s13 = inlined_call_operand.vmem [shape: f32[64,32], index: 13, kind: input, shape index: {}]   ;;  %s2292_s14 = inlined_call_operand.vmem [shape: f32[1,32], index: 14, kind: input, shape index: {}]   ;;  %s2293_s15 = inlined_call_operand.vmem [shape: f32[32,32], index: 15, kind: input, shape index: {}]   ;;  %s2294_s16 = inlined_call_operand.vmem [shape: f32[1,32], index: 16, kind: input, shape index: {}]   ;;  %s2295_s17 = inlined_call_operand.vmem [shape: f32[32,8], index: 17, kind: input, shape index: {}]   ;;  %s2296_s18 = inlined_call_operand.vmem [shape: f32[1,8], index: 18, kind: input, shape index: {}]   ;;  %s2297_s19 = inlined_call_operand.vmem [shape: f32[8,8], index: 19, kind: input, shape index: {}]   ;;  %s2298_s20 = inlined_call_operand.vmem [shape: f32[1,8], index: 20, kind: input, shape index: {}]   ;;  %s2299_s21 = inlined_call_operand.hbm [shape: f32[2,8], index: 21, kind: output, shape index: {}]  }
   0x1   :  { %2304 = sst [smem:[#allocation5_spill]] %s2278_s0 }
   0x2   :  { %2305 = sst [smem:[#allocation6_spill]] %s2279_s1 }
   0x3   :  { %2306 = sst [smem:[#allocation7_spill]] %s2280_s2 }
   0x4   :  { %2307 = sst [smem:[#allocation8_spill]] %s2281_s3 }
   0x5   :  { %2308 = sst [smem:[#allocation9_spill]] %s2282_s4 }
   0x6   :  { %2309 = sst [smem:[#allocation10_spill]] %s2283_s5 }
   0x7   :  { %s2310_s26 = sld [smem:[#allocation5_spill]]  ;;  %s1709_s1 = smov 16  }
   0xd   :  { %v1380_v0 = vld [vmem:[%s2310_s26 + $0x10] sm:$0xff]  ;;  %v1381_v1 = vld [vmem:[%s2310_s26 + $0x18] sm:$0xff]  ;;  %v1386_v2 = vld [vmem:[%s2310_s26 + $0x40] sm:$0xff] }
   0xe   :  { %v1650_v3 = vpack.i.bf16 %v1381_v1, %v1380_v0  ;;  %v1387_v4 = vld [vmem:[%s2310_s26 + $0x48] sm:$0xff]  ;;  %v1382_v6 = vld [vmem:[%s2310_s26 + $0x20] sm:$0xff]  ;;  %v1388_v8 = vld [vmem:[%s2310_s26 + $0x50] sm:$0xff] }
   0xf   :  { %v1660_v5 = vpack.i.bf16 %v1387_v4, %v1386_v2  ;;  %v1383_v7 = vld [vmem:[%s2310_s26 + $0x28] sm:$0xff]  ;;  %v1389_v9 = vld [vmem:[%s2310_s26 + $0x58] sm:$0xff] }
  0x10   :  { %1651 = vrot.lane.b32.xlu0 %v1650_v3, %s1709_s1 }
  0x11   :  { %1661 = vrot.lane.b32.xlu1 %v1660_v5, %s1709_s1 }
  0x12   :  { %26 = vsyncpa [#allocation3], 0  ;;  %v1655_v10 = vpack.i.bf16 %v1383_v7, %v1382_v6  ;;  %v1665_v11 = vpack.i.bf16 %v1389_v9, %v1388_v8  ;;  %s1710_s3 = smov 32   ;;  %s2311_s0 = sld [smem:[#allocation6_spill]]  ;;  %vm94_vm0 = vcmask 130048   ;;  %v70_v25 = vld [vmem:[%s2310_s26] sm:$0xff] }
  0x13   :  { %v71_v26 = vld [vmem:[%s2310_s26 + $0x8] sm:$0xff]  ;;  %vm97_vm1 = vcmask 261120   ;;  %vm131_vm2 = vcmask 1040384   ;;  %vm180_vm3 = vcmask 392192   ;;  %v1384_v41 = vld [vmem:[%s2310_s26 + $0x30] sm:$0xff]  ;;  %v1385_v42 = vld [vmem:[%s2310_s26 + $0x38] sm:$0xff] }
  0x14   :  { %vm149_vm4 = vcmask 1041408   ;;  %vm140_vm5 = vcmask 1042432   ;;  %vm314_vm6 = vcmask 1046528   ;;  %vm339_vm7 = vcmask 1045504   ;;  %s2312_s4 = sld [smem:[#allocation7_spill]]  ;;  %s1711_s2 = smov 127  }
  0x15   :  { %s2313_s22 = sld [smem:[#allocation9_spill]]  ;;  %vm438_vm8 = vcmask 1039360   ;;  %vm490_vm9 = vcmask 121856   ;;  %vm593_vm10 = vcmask 523264   ;;  %vm842_vm11 = vcmask 56320  }
  0x16   :  { %s2314_s28 = sld [smem:[#allocation8_spill]]  ;;  %vm903_vm12 = vcmask 1044480   ;;  %vm1105_vm13 = vcmask 515072   ;;  %vm1139_vm14 = vcmask 23552   ;;  %vm1308_vm15 = vcmask 64512  }
  0x18   :  { %1656 = vrot.lane.b32.xlu0 %v1655_v10, %s1710_s3  ;;  %v1615_v12 = vld [vmem:[%s2311_s0 + $0x10] sm:$0xff]  ;;  %v1618_v13 = vld [vmem:[%s2311_s0 + $0x28] sm:$0xff]  ;;  %v1621_v14 = vld [vmem:[%s2311_s0 + $0x40] sm:$0xff] }
  0x19   :  { %1666 = vrot.lane.b32.xlu1 %v1665_v11, %s1710_s3  ;;  %195 = vmatpush.bf16.msra.mxu0 %v1615_v12  ;;  %v1614_v15 = vld [vmem:[%s2311_s0 + $0x8] sm:$0xff]  ;;  %v1617_v16 = vld [vmem:[%s2311_s0 + $0x20] sm:$0xff]  ;;  %v1620_v17 = vld [vmem:[%s2311_s0 + $0x38] sm:$0xff] }
  0x1a   :  { %243 = vmatpush.bf16.msra.mxu1 %v1618_v13  ;;  %291 = vmatpush.bf16.msra.mxu2 %v1621_v14  ;;  %v1613_v18 = vld [vmem:[%s2311_s0] sm:$0xff]  ;;  %v1616_v19 = vld [vmem:[%s2311_s0 + $0x18] sm:$0xff]  ;;  %v1619_v20 = vld [vmem:[%s2311_s0 + $0x30] sm:$0xff] }
  0x1b   :  { %v1917_v11 = vld [vmem:[%s2312_s4] ss:$0 sm:$0xff]  ;;  %s2315_s4 = sld [smem:[#allocation10_spill]] }
  0x1d   :  { %196 = vmatpush.bf16.msra.mxu0 %v1614_v15  ;;  %v437_v15 = vld [vmem:[%s2313_s22 + $0x78] sm:$0x7f] }
  0x1e   :  { %244 = vmatpush.bf16.msra.mxu1 %v1617_v16  ;;  %292 = vmatpush.bf16.msra.mxu2 %v1620_v17  ;;  %v436_v16 = vld [vmem:[%s2313_s22 + $0x70] sm:$0xff] }
  0x1f   :  { %1447 = vmatpush.msk.msra.mxu3 %vm314_vm6, %v437_v15 }
  0x21   :  { %197 = vmatpush.bf16.msra.mxu0 %v1613_v18  ;;  %458 = vmatpush.msra.mxu3 %v436_v16 }
  0x22   :  { %245 = vmatpush.bf16.msra.mxu1 %v1616_v19  ;;  %293 = vmatpush.bf16.msra.mxu2 %v1619_v20 }
  0x82   :  { %v1652_v21 = vpop.permute.xlu0 %1651 }
  0x83   :  { %v1662_v22 = vpop.permute.xlu1 %1661  ;;  %v1654_v23 = vunpack.i.h.bf16 %v1652_v21  ;;  %v1653_v24 = vunpack.i.l.bf16 %v1652_v21 }
  0x84   :  { %v1664_v36 = vunpack.i.h.bf16 %v1662_v22  ;;  %v1663_v37 = vunpack.i.l.bf16 %v1662_v22  ;;  %v435_v22 = vld [vmem:[%s2313_s22 + $0x68] sm:$0xff] }
  0x85   :  { %v95_v30 = vsel %vm94_vm0, %v70_v25, %v1653_v24  ;;  %v96_v31 = vsel %vm94_vm0, %v71_v26, %v1654_v23  ;;  %v434_v26 = vld [vmem:[%s2313_s22 + $0x60] sm:$0xff]  ;;  %459 = vmatpush.msra.mxu3 %v435_v22 }
  0x86   :  { %v126_v46 = vsel %vm94_vm0, %v1385_v42, %v1664_v36  ;;  %v125_v47 = vsel %vm94_vm0, %v1384_v41, %v1663_v37  ;;  %vm1337_vm0 = vcmask 58368  }
  0x87   :  { %460 = vmatpush.msra.mxu3 %v434_v26 }
  0x8a   :  { %v1657_v27 = vpop.permute.xlu0 %1656 }
  0x8b   :  { %v1659_v28 = vunpack.i.h.bf16 %v1657_v27  ;;  %v1658_v29 = vunpack.i.l.bf16 %v1657_v27  ;;  %v1667_v38 = vpop.permute.xlu1 %1666 }
  0x8c   :  { %v1669_v44 = vunpack.i.h.bf16 %v1667_v38  ;;  %v1668_v45 = vunpack.i.l.bf16 %v1667_v38 }
  0x8d   :  { %v98_v32 = vsel %vm97_vm1, %v95_v30, %v1658_v29  ;;  %v99_v33 = vsel %vm97_vm1, %v96_v31, %v1659_v28  ;;  %v433_v29 = vld [vmem:[%s2313_s22 + $0x58] sm:$0xff] }
  0x8e   :  { %v132_v34 = vrot.slane %v98_v32, 7  ;;  %v133_v35 = vrot.slane %v99_v33, 7  ;;  %v127_v48 = vsel %vm97_vm1, %v125_v47, %v1668_v45  ;;  %v128_v49 = vsel %vm97_vm1, %v126_v46, %v1669_v44  ;;  %v432_v33 = vld [vmem:[%s2313_s22 + $0x50] sm:$0xff]  ;;  %461 = vmatpush.msra.mxu3 %v433_v29  ;;  %v430_v45 = vld [vmem:[%s2313_s22 + $0x40] sm:$0xff] }
  0x8f   :  { %v141_v51 = vrot.slane %v127_v48, 5  ;;  %v142_v52 = vrot.slane %v128_v49, 5  ;;  %v429_v48 = vld [vmem:[%s2313_s22 + $0x38] sm:$0xff] }
  0x90   :  { %v134_v39 = vsel %vm131_vm2, %v132_v34, %v133_v35  ;;  %v147_v40 = vsel %vm131_vm2, 0.0, %v132_v34  ;;  %v148_v50 = vsel %vm131_vm2, %v133_v35, 0.0  ;;  %462 = vmatpush.msra.mxu3 %v432_v33  ;;  %v1633_v33 = vld [vmem:[%s2315_s4 + $0x58] sm:$0xff] }
  0x91   :  { %v153_v43 = vpack.c.bf16 %v134_v39, %v147_v40  ;;  %v150_v53 = vsel %vm149_vm4, %v148_v50, 0.0  ;;  %v143_v54 = vsel %vm140_vm5, %v141_v51, %v142_v52  ;;  %v152_v57 = vsel %vm140_vm5, %v142_v52, 0.0  ;;  %v431_v40 = vld [vmem:[%s2313_s22 + $0x48] sm:$0xff]  ;;  %v428_v52 = vld [vmem:[%s2313_s22 + $0x30] sm:$0xff] }
  0x92   :  { %v151_v55 = vsel %vm140_vm5, %v150_v53, %v141_v51  ;;  %v155_v58 = vpack.c.bf16 %v152_v57, %v152_v57  ;;  %463 = vmatpush.msra.mxu3 %v431_v40 }
  0x93   :  { %1402 = vmatmul.msk.bf16.vlgmr.msra.gmra.mxu0 %vm180_vm3, %v153_v43  ;;  %1423 = vmatmul.msk.bf16.vlgmr.msra.gmra.mxu1 %vm180_vm3, %v153_v43  ;;  %v154_v56 = vpack.c.bf16 %v143_v54, %v151_v55 }
  0x94   :  { %1444 = vmatmul.msk.bf16.vlgmr.msra.gmra.mxu2 %vm180_vm3, %v153_v43  ;;  %464 = vmatpush.msra.mxu3 %v430_v45  ;;  %v1627_v45 = vld [vmem:[%s2315_s4 + $0x28] sm:$0xff] }
  0x96   :  { %465 = vmatpush.msra.mxu3 %v429_v48  ;;  %v1626_v48 = vld [vmem:[%s2315_s4 + $0x20] sm:$0xff] }
  0x98   :  { %466 = vmatpush.msra.mxu3 %v428_v52 }
  0xa3   :  { %1403 = vmatmul.msk.bf16.gmra.mxu0 %vm180_vm3, %v154_v56  ;;  %1424 = vmatmul.msk.bf16.gmra.mxu1 %vm180_vm3, %v154_v56 }
  0xa4   :  { %1445 = vmatmul.msk.bf16.gmra.mxu2 %vm180_vm3, %v154_v56 }
  0xb3   :  { %1404 = vmatmul.msk.bf16.gmra.mxu0 %vm180_vm3, %v155_v58  ;;  %1425 = vmatmul.msk.bf16.gmra.mxu1 %vm180_vm3, %v155_v58 }
  0xb4   :  { %1446 = vmatmul.msk.bf16.gmra.mxu2 %vm180_vm3, %v155_v58 }
 0x110   :  { %v199_v59 = vpop.f32.mrf.mxu0  ;;  %v247_v60 = vpop.f32.mrf.mxu1 }
 0x111   :  { %v315_v1 = vrot.slane %v247_v60, 1 }
 0x117   :  { %v295_v61 = vpop.f32.mrf.mxu2 }
 0x118   :  { %v201_v62 = vpop.f32.mrf.mxu0  ;;  %v249_v63 = vpop.f32.mrf.mxu1  ;;  %v340_v3 = vrot.slane %v295_v61, 2 }
 0x119   :  { %v316_v0 = vrot.slane %v249_v63, 1 }
 0x11b   :  { %v317_v4 = vsel %vm314_vm6, %v315_v1, %v316_v0 }
 0x11c   :  { %v329_v10 = vadd.f32 %v317_v4, %v199_v59  ;;  %v427_v59 = vld [vmem:[%s2313_s22 + $0x28] sm:$0xff]  ;;  %v425_v4 = vld [vmem:[%s2313_s22 + $0x18] sm:$0xff] }
 0x11d   :  { %467 = vmatpush.msra.mxu3 %v427_v59 }
 0x11f   :  { %v297_v2 = vpop.f32.mrf.mxu2 }
 0x120   :  { %v341_v5 = vrot.slane %v297_v2, 2  ;;  %v204_v6 = vpop.f32.mrf.mxu0  ;;  %v252_v7 = vpop.f32.mrf.mxu1 }
 0x121   :  { %v318_v9 = vrot.slane %v252_v7, 1 }
 0x122   :  { %v342_v8 = vsel %vm339_vm7, %v340_v3, %v341_v5 }
 0x123   :  { %v354_v12 = vadd.f32 %v342_v8, %v329_v10  ;;  %v319_v13 = vsel %vm314_vm6, %v316_v0, %v318_v9  ;;  %v426_v0 = vld [vmem:[%s2313_s22 + $0x20] sm:$0xff]  ;;  %v424_v8 = vld [vmem:[%s2313_s22 + $0x10] sm:$0xff] }
 0x124   :  { %v330_v20 = vadd.f32 %v319_v13, %v201_v62  ;;  %468 = vmatpush.msra.mxu3 %v426_v0 }
 0x125   :  { %v363_v21 = vadd.f32 %v1917_v11, %v354_v12 }
 0x126   :  { %469 = vmatpush.msra.mxu3 %v425_v4 }
 0x127   :  { %v300_v14 = vpop.f32.mrf.mxu2  ;;  %v368_v28 = vmax.f32 %v363_v21, 0.0 }
 0x128   :  { %v343_v17 = vrot.slane %v300_v14, 2  ;;  %v206_v18 = vpop.f32.mrf.mxu0  ;;  %v254_v19 = vpop.f32.mrf.mxu1  ;;  %470 = vmatpush.msra.mxu3 %v424_v8 }
 0x129   :  { %v320_v24 = vrot.slane %v254_v19, 1  ;;  %v378_v38 = vrot.slane %v368_v28, 1 }
 0x12a   :  { %v344_v23 = vsel %vm339_vm7, %v341_v5, %v343_v17 }
 0x12b   :  { %v355_v25 = vadd.f32 %v344_v23, %v330_v20  ;;  %v321_v30 = vsel %vm314_vm6, %v318_v9, %v320_v24 }
 0x12c   :  { %v331_v37 = vadd.f32 %v321_v30, %v204_v6  ;;  %v489_v30 = vld [vmem:[%s2314_s28] sm:$0xff] }
 0x12d   :  { %v364_v27 = vadd.f32 %v1917_v11, %v355_v25 }
 0x12f   :  { %v369_v31 = vmax.f32 %v364_v27, 0.0  ;;  %v302_v32 = vpop.f32.mrf.mxu2 }
 0x130   :  { %v345_v34 = vrot.slane %v302_v32, 2  ;;  %v209_v35 = vpop.f32.mrf.mxu0  ;;  %v257_v36 = vpop.f32.mrf.mxu1  ;;  %v1625_v32 = vld [vmem:[%s2315_s4 + $0x18] sm:$0xff] }
 0x131   :  { %v379_v39 = vrot.slane %v369_v31, 1  ;;  %v322_v42 = vrot.slane %v257_v36, 1  ;;  %604 = vmatpush.bf16.msrb.mxu2 %v1625_v32  ;;  %v1632_v36 = vld [vmem:[%s2315_s4 + $0x50] sm:$0xff] }
 0x132   :  { %v346_v41 = vsel %vm339_vm7, %v343_v17, %v345_v34  ;;  %v422_v17 = vld [vmem:[%s2313_s22] sm:$0xff] }
 0x133   :  { %v356_v43 = vadd.f32 %v346_v41, %v331_v37  ;;  %v380_v44 = vsel %vm314_vm6, %v378_v38, %v379_v39  ;;  %v323_v49 = vsel %vm314_vm6, %v320_v24, %v322_v42  ;;  %v333_v53 = vadd.f32 %v322_v42, %v209_v35  ;;  %v1624_v35 = vld [vmem:[%s2315_s4 + $0x10] sm:$0xff] }
 0x134   :  { %v392_v46 = vmax.f32 %v368_v28, %v380_v44  ;;  %v332_v57 = vadd.f32 %v323_v49, %v206_v18  ;;  %v1622_v49 = vld [vmem:[%s2315_s4] sm:$0xff] }
 0x135   :  { %v365_v47 = vadd.f32 %v1917_v11, %v356_v43  ;;  %605 = vmatpush.bf16.msrb.mxu2 %v1624_v35 }
 0x136   :  { %402 = vrot.lane.b32.xlu2 %v392_v46, %s1711_s2 }
 0x137   :  { %v370_v50 = vmax.f32 %v365_v47, 0.0  ;;  %v305_v51 = vpop.f32.mrf.mxu2  ;;  %v1631_v47 = vld [vmem:[%s2315_s4 + $0x48] sm:$0xff] }
 0x138   :  { %v347_v54 = vrot.slane %v305_v51, 2  ;;  %v211_v55 = vpop.f32.mrf.mxu0  ;;  %v259_v56 = vpop.f32.mrf.mxu1 }
 0x139   :  { %v381_v58 = vrot.slane %v370_v50, 1 }
 0x13a   :  { %v348_v60 = vsel %vm339_vm7, %v345_v34, %v347_v54  ;;  %v358_v61 = vadd.f32 %v347_v54, %v333_v53  ;;  %v1628_v34 = vld [vmem:[%s2315_s4 + $0x30] sm:$0xff] }
 0x13b   :  { %v357_v62 = vadd.f32 %v348_v60, %v332_v57  ;;  %v382_v63 = vsel %vm314_vm6, %v379_v39, %v381_v58 }
 0x13c   :  { %v367_v1 = vadd.f32 %v1917_v11, %v358_v61  ;;  %v393_v2 = vmax.f32 %v369_v31, %v382_v63  ;;  %v1629_v31 = vld [vmem:[%s2315_s4 + $0x38] sm:$0xff] }
 0x13d   :  { %v366_v3 = vadd.f32 %v1917_v11, %v357_v62  ;;  %v423_v11 = vld [vmem:[%s2313_s22 + $0x8] sm:$0xff] }
 0x13e   :  { %v372_v5 = vmax.f32 %v367_v1, 0.0  ;;  %404 = vrot.lane.b32.xlu2 %v393_v2, %s1711_s2  ;;  %471 = vmatpush.msra.mxu3 %v423_v11  ;;  %v802_v1 = vld [vmem:[%s2286_s8 + $0x78] sm:$0x7f] }
 0x13f   :  { %v371_v6 = vmax.f32 %v366_v3, 0.0  ;;  %v307_v7 = vpop.f32.mrf.mxu2 }
 0x140   :  { %v385_v9 = vrot.slane %v372_v5, 1  ;;  %472 = vmatpush.msra.mxu3 %v422_v17  ;;  %v1671_v17 = vld [vmem:[%s2284_s6] ss:$0 sm:$0xff] }
 0x141   :  { %v383_v10 = vrot.slane %v371_v6, 1 }
 0x142   :  { %v396_v15 = vmax.f32 %v372_v5, %v385_v9  ;;  %655 = vmatpush.bf16.msrb.mxu3 %v1629_v31 }
 0x143   :  { %v384_v12 = vsel %vm314_vm6, %v381_v58, %v383_v10  ;;  %v386_v13 = vsel %vm314_vm6, %v383_v10, %v385_v9 }
 0x144   :  { %v394_v14 = vmax.f32 %v370_v50, %v384_v12  ;;  %v395_v16 = vmax.f32 %v371_v6, %v386_v13  ;;  %v1630_v50 = vld [vmem:[%s2315_s4 + $0x40] sm:$0xff] }
 0x146   :  { %406 = vrot.lane.b32.xlu0 %v394_v14, %s1711_s2  ;;  %410 = vrot.lane.b32.xlu2 %v396_v15, %s1711_s2 }
 0x147   :  { %408 = vrot.lane.b32.xlu1 %v395_v16, %s1711_s2  ;;  %656 = vmatpush.bf16.msrb.mxu3 %v1628_v34 }
 0x14b   :  { %657 = vmatpush.bf16.msrb.mxu3 %v1627_v45  ;;  %v798_v45 = vld [vmem:[%s2286_s8 + $0x58] sm:$0xff] }
 0x14f   :  { %658 = vmatpush.bf16.msrb.mxu3 %v1626_v48  ;;  %v795_v48 = vld [vmem:[%s2286_s8 + $0x40] sm:$0xff] }
 0x190   :  { %v403_v18 = vpop.permute.xlu2 %402 }
 0x191   :  { %v417_v19 = vmax.f32 %v392_v46, %v403_v18  ;;  %v1623_v46 = vld [vmem:[%s2315_s4 + $0x8] sm:$0xff] }
 0x192   :  { %606 = vmatpush.bf16.msrb.mxu2 %v1623_v46  ;;  %v797_v46 = vld [vmem:[%s2286_s8 + $0x50] sm:$0xff] }
 0x193   :  { %1448 = vmatmul.msk.f32.vlgmr.msra.gmra.mxu3 %vm438_vm8, %v417_v19 }
 0x196   :  { %607 = vmatpush.bf16.msrb.mxu2 %v1622_v49  ;;  %v794_v49 = vld [vmem:[%s2286_s8 + $0x38] sm:$0xff] }
 0x198   :  { %v405_v20 = vpop.permute.xlu2 %404 }
 0x199   :  { %v418_v21 = vmax.f32 %v393_v2, %v405_v20  ;;  %v801_v2 = vld [vmem:[%s2286_s8 + $0x70] sm:$0xff] }
 0x19b   :  { %1449 = vmatmul.msk.f32.gmra.mxu3 %vm438_vm8, %v418_v21 }
 0x1a0   :  { %v411_v26 = vpop.permute.xlu2 %410 }
 0x1a1   :  { %v421_v27 = vmax.f32 %v396_v15, %v411_v26 }
 0x1b8   :  { %v407_v22 = vpop.permute.xlu0 %406 }
 0x1b9   :  { %v419_v23 = vmax.f32 %v394_v14, %v407_v22  ;;  %v409_v24 = vpop.permute.xlu1 %408 }
 0x1ba   :  { %v420_v25 = vmax.f32 %v395_v16, %v409_v24 }
 0x1bb   :  { %1450 = vmatmul.msk.f32.gmra.mxu3 %vm438_vm8, %v419_v23 }
 0x1c3   :  { %1451 = vmatmul.msk.f32.gmra.mxu3 %vm438_vm8, %v420_v25 }
 0x1cb   :  { %1452 = vmatmul.msk.f32.gmra.mxu3 %vm438_vm8, %v421_v27 }
 0x216   :  { %v474_v28 = vpop.f32.mrf.mxu3 }
 0x21e   :  { %v477_v29 = vpop.f32.mrf.mxu3 }
 0x21f   :  { %1453 = vmatpush.msk.msrb.mxu0 %vm314_vm6, %v477_v29 }
 0x221   :  { %512 = vmatpush.msrb.mxu0 %v474_v28 }
 0x222   :  { %1454 = vmatmul.msk.f32.vlgmr.msrb.gmra.mxu0 %vm490_vm9, %v489_v30 }
 0x223   :  { %706 = vmatpush.bf16.msra.mxu0 %v1633_v33 }
 0x227   :  { %707 = vmatpush.bf16.msra.mxu0 %v1632_v36 }
 0x22b   :  { %708 = vmatpush.bf16.msra.mxu0 %v1631_v47  ;;  %v796_v47 = vld [vmem:[%s2286_s8 + $0x48] sm:$0xff] }
 0x22f   :  { %709 = vmatpush.bf16.msra.mxu0 %v1630_v50  ;;  %v793_v50 = vld [vmem:[%s2286_s8 + $0x30] sm:$0xff] }
 0x23e   :  { %v480_v37 = vpop.f32.mrf.mxu3 }
 0x23f   :  { %v520_v42 = vrot.slane %v480_v37, 2 }
 0x246   :  { %v483_v38 = vpop.f32.mrf.mxu3 }
 0x247   :  { %v521_v40 = vrot.slane %v483_v38, 2 }
 0x249   :  { %v522_v44 = vsel %vm339_vm7, %v520_v42, %v521_v40 }
 0x24e   :  { %v486_v39 = vpop.f32.mrf.mxu3 }
 0x24f   :  { %v523_v41 = vrot.slane %v486_v39, 2 }
 0x251   :  { %v524_v43 = vsel %vm339_vm7, %v521_v40, %v523_v41 }
 0x252   :  { %1455 = vmatpush.msk.msrb.mxu1 %vm314_vm6, %v524_v43  ;;  %v800_v43 = vld [vmem:[%s2286_s8 + $0x68] sm:$0xff] }
 0x254   :  { %543 = vmatpush.msrb.mxu1 %v522_v44  ;;  %v799_v44 = vld [vmem:[%s2286_s8 + $0x60] sm:$0xff] }
 0x255   :  { %1456 = vmatmul.msk.f32.vlgmr.msrb.gmra.mxu1 %vm490_vm9, %v489_v30 }
 0x256   :  { %1527 = vmatpush.msk.msra.mxu1 %vm314_vm6, %v802_v1 }
 0x258   :  { %816 = vmatpush.msra.mxu1 %v801_v2 }
 0x25a   :  { %817 = vmatpush.msra.mxu1 %v800_v43 }
 0x25c   :  { %818 = vmatpush.msra.mxu1 %v799_v44 }
 0x25e   :  { %819 = vmatpush.msra.mxu1 %v798_v45  ;;  %v1672_v45 = vld [vmem:[%s2288_s10] ss:$0 sm:$0xff]  ;;  %s1371_s10 = sshll.u32 %s2299_s21, 4  ;;  %s1372_s10 = int_to_ptr.hbm [resolvable:$true] %s1371_s10 }
 0x260   :  { %820 = vmatpush.msra.mxu1 %v797_v46 }
 0x262   :  { %821 = vmatpush.msra.mxu1 %v796_v47 }
 0x264   :  { %822 = vmatpush.msra.mxu1 %v795_v48 }
 0x266   :  { %823 = vmatpush.msra.mxu1 %v794_v49 }
 0x268   :  { %824 = vmatpush.msra.mxu1 %v793_v50 }
 0x29f   :  { %v514_v51 = vpop.f32.mrf.mxu0 }
 0x2a0   :  { %v549_v52 = vrot.slane %v514_v51, 7  ;;  %v792_v51 = vld [vmem:[%s2286_s8 + $0x28] sm:$0xff] }
 0x2a1   :  { %825 = vmatpush.msra.mxu1 %v792_v51 }
 0x2a2   :  { %v555_v53 = vsel %vm131_vm2, %v549_v52, 0.0  ;;  %v554_v57 = vsel %vm131_vm2, 0.0, %v549_v52  ;;  %v791_v52 = vld [vmem:[%s2286_s8 + $0x20] sm:$0xff] }
 0x2a3   :  { %v556_v54 = vsel %vm149_vm4, %v555_v53, 0.0  ;;  %v790_v53 = vld [vmem:[%s2286_s8 + $0x18] sm:$0xff]  ;;  %826 = vmatpush.msra.mxu1 %v791_v52 }
 0x2a5   :  { %827 = vmatpush.msra.mxu1 %v790_v53 }
 0x2d2   :  { %v545_v55 = vpop.f32.mrf.mxu1 }
 0x2d3   :  { %v552_v56 = vrot.slane %v545_v55, 5  ;;  %v788_v55 = vld [vmem:[%s2286_s8 + $0x8] sm:$0xff] }
 0x2d5   :  { %v557_v58 = vsel %vm140_vm5, %v556_v54, %v552_v56  ;;  %v558_v60 = vsel %vm140_vm5, %v552_v56, 0.0  ;;  %v789_v54 = vld [vmem:[%s2286_s8 + $0x10] sm:$0xff]  ;;  %v787_v56 = vld [vmem:[%s2286_s8] sm:$0xff] }
 0x2d6   :  { %v559_v59 = vpack.c.bf16 %v557_v58, %v554_v57  ;;  %v560_v61 = vpack.c.bf16 %v558_v60, %v558_v60  ;;  %828 = vmatpush.msra.mxu1 %v789_v54 }
 0x2d8   :  { %1499 = vmatmul.msk.bf16.vlgmr.msrb.gmra.mxu3 %vm593_vm10, %v559_v59  ;;  %1473 = vmatmul.msk.bf16.vlgmr.msrb.gmra.mxu2 %vm593_vm10, %v559_v59 }
 0x2d9   :  { %1525 = vmatmul.msk.bf16.vlgmr.msra.gmra.mxu0 %vm593_vm10, %v559_v59  ;;  %829 = vmatpush.msra.mxu1 %v788_v55 }
 0x2db   :  { %830 = vmatpush.msra.mxu1 %v787_v56 }
 0x2e8   :  { %1500 = vmatmul.msk.bf16.gmra.mxu3 %vm593_vm10, %v560_v61  ;;  %1474 = vmatmul.msk.bf16.gmra.mxu2 %vm593_vm10, %v560_v61 }
 0x2e9   :  { %1526 = vmatmul.msk.bf16.gmra.mxu0 %vm593_vm10, %v560_v61 }
 0x356   :  { %v711_v62 = vpop.f32.mrf.mxu0 }
 0x357   :  { %v737_v12 = vrot.slane %v711_v62, 2 }
 0x35b   :  { %v660_v63 = vpop.f32.mrf.mxu3  ;;  %v609_v0 = vpop.f32.mrf.mxu2 }
 0x35c   :  { %v723_v6 = vrot.slane %v660_v63, 1  ;;  %v1637_v63 = vld [vmem:[%s2287_s9 + $0x18] sm:$0xff] }
 0x35d   :  { %948 = vmatpush.bf16.msra.mxu3 %v1637_v63 }
 0x35e   :  { %v713_v3 = vpop.f32.mrf.mxu0 }
 0x35f   :  { %v738_v8 = vrot.slane %v713_v3, 2 }
 0x361   :  { %v739_v13 = vsel %vm339_vm7, %v737_v12, %v738_v8  ;;  %v1644_v12 = vld [vmem:[%s2287_s9 + $0x50] sm:$0xff] }
 0x363   :  { %v662_v4 = vpop.f32.mrf.mxu3  ;;  %v611_v5 = vpop.f32.mrf.mxu2 }
 0x364   :  { %v724_v7 = vrot.slane %v662_v4, 1 }
 0x366   :  { %v725_v9 = vsel %vm314_vm6, %v723_v6, %v724_v7  ;;  %v716_v10 = vpop.f32.mrf.mxu0 }
 0x367   :  { %v731_v11 = vadd.f32 %v725_v9, %v609_v0  ;;  %v740_v18 = vrot.slane %v716_v10, 2  ;;  %v841_v0 = vld [vmem:[%s2285_s7] sm:$0xf]  ;;  %v1645_v9 = vld [vmem:[%s2287_s9 + $0x58] sm:$0xff]  ;;  %v1640_v10 = vld [vmem:[%s2287_s9 + $0x30] sm:$0xff] }
 0x368   :  { %1042 = vmatpush.bf16.msrb.mxu1 %v1645_v9 }
 0x369   :  { %v745_v14 = vadd.f32 %v739_v13, %v731_v11  ;;  %v741_v25 = vsel %vm339_vm7, %v738_v8, %v740_v18  ;;  %v1636_v8 = vld [vmem:[%s2287_s9 + $0x10] sm:$0xff]  ;;  %v1635_v11 = vld [vmem:[%s2287_s9 + $0x8] sm:$0xff] }
 0x36a   :  { %949 = vmatpush.bf16.msra.mxu3 %v1636_v8  ;;  %v1639_v13 = vld [vmem:[%s2287_s9 + $0x28] sm:$0xff] }
 0x36b   :  { %v665_v15 = vpop.f32.mrf.mxu3  ;;  %v614_v16 = vpop.f32.mrf.mxu2  ;;  %v752_v24 = vadd.f32 %v1671_v17, %v745_v14  ;;  %v1643_v14 = vld [vmem:[%s2287_s9 + $0x48] sm:$0xff] }
 0x36c   :  { %v726_v19 = vrot.slane %v665_v15, 1  ;;  %1043 = vmatpush.bf16.msrb.mxu1 %v1644_v12  ;;  %v1634_v15 = vld [vmem:[%s2287_s9] sm:$0xff]  ;;  %v1215_v12 = vld [vmem:[%s2291_s13 + $0x38] sm:$0xff] }
 0x36d   :  { %v755_v32 = vmax.f32 %v752_v24, 0.0 }
 0x36e   :  { %v727_v20 = vsel %vm314_vm6, %v724_v7, %v726_v19  ;;  %v733_v21 = vadd.f32 %v726_v19, %v614_v16  ;;  %v718_v22 = vpop.f32.mrf.mxu0  ;;  %v1641_v7 = vld [vmem:[%s2287_s9 + $0x38] sm:$0xff]  ;;  %950 = vmatpush.bf16.msra.mxu3 %v1635_v11  ;;  %v1638_v16 = vld [vmem:[%s2287_s9 + $0x20] sm:$0xff] }
 0x36f   :  { %v732_v23 = vadd.f32 %v727_v20, %v611_v5  ;;  %v761_v36 = vrot.slane %v755_v32, 1  ;;  %995 = vmatpush.bf16.msrb.mxu0 %v1641_v7 }
 0x370   :  { %v747_v26 = vadd.f32 %v740_v18, %v733_v21  ;;  %1044 = vmatpush.bf16.msrb.mxu1 %v1643_v14  ;;  %v1213_v14 = vld [vmem:[%s2291_s13 + $0x28] sm:$0xff] }
 0x371   :  { %v746_v27 = vadd.f32 %v741_v25, %v732_v23 }
 0x372   :  { %v754_v28 = vadd.f32 %v1671_v17, %v747_v26  ;;  %951 = vmatpush.bf16.msra.mxu3 %v1634_v15  ;;  %v1212_v15 = vld [vmem:[%s2291_s13 + $0x20] sm:$0xff] }
 0x373   :  { %v616_v29 = vpop.f32.mrf.mxu2  ;;  %v667_v30 = vpop.f32.mrf.mxu3  ;;  %v753_v31 = vadd.f32 %v1671_v17, %v746_v27  ;;  %996 = vmatpush.bf16.msrb.mxu0 %v1640_v10  ;;  %v1642_v17 = vld [vmem:[%s2287_s9 + $0x40] sm:$0xff] }
 0x374   :  { %v757_v33 = vmax.f32 %v754_v28, 0.0  ;;  %1045 = vmatpush.bf16.msrb.mxu1 %v1642_v17  ;;  %v1104_v28 = vld [vmem:[%s2290_s12 + $0x38] sm:$0x7f]  ;;  %v1103_v29 = vld [vmem:[%s2290_s12 + $0x30] sm:$0xff]  ;;  %v1102_v30 = vld [vmem:[%s2290_s12 + $0x28] sm:$0xff] }
 0x375   :  { %v756_v34 = vmax.f32 %v753_v31, 0.0  ;;  %v1210_v17 = vld [vmem:[%s2291_s13 + $0x10] sm:$0xff] }
 0x376   :  { %v764_v35 = vrot.slane %v757_v33, 1 }
 0x377   :  { %v762_v37 = vrot.slane %v756_v34, 1  ;;  %997 = vmatpush.bf16.msrb.mxu0 %v1639_v13  ;;  %v1214_v13 = vld [vmem:[%s2291_s13 + $0x30] sm:$0xff] }
 0x378   :  { %v771_v38 = vmax.f32 %v757_v33, %v764_v35 }
 0x379   :  { %v763_v39 = vsel %vm314_vm6, %v761_v36, %v762_v37  ;;  %v765_v40 = vsel %vm314_vm6, %v762_v37, %v764_v35  ;;  %v1099_v35 = vld [vmem:[%s2290_s12 + $0x10] sm:$0xff] }
 0x37a   :  { %779 = vrot.lane.b32.xlu2 %v771_v38, %s1711_s2  ;;  %v769_v41 = vmax.f32 %v755_v32, %v763_v39  ;;  %v770_v42 = vmax.f32 %v756_v34, %v765_v40  ;;  %v1101_v32 = vld [vmem:[%s2290_s12 + $0x20] sm:$0xff]  ;;  %v1100_v34 = vld [vmem:[%s2290_s12 + $0x18] sm:$0xff] }
 0x37b   :  { %998 = vmatpush.bf16.msrb.mxu0 %v1638_v16  ;;  %v1211_v16 = vld [vmem:[%s2291_s13 + $0x18] sm:$0xff] }
 0x37c   :  { %775 = vrot.lane.b32.xlu0 %v769_v41, %s1711_s2  ;;  %777 = vrot.lane.b32.xlu1 %v770_v42, %s1711_s2 }
 0x3d4   :  { %v780_v61 = vpop.permute.xlu2 %779 }
 0x3d5   :  { %v786_v62 = vmax.f32 %v771_v38, %v780_v61  ;;  %v1097_v61 = vld [vmem:[%s2290_s12] sm:$0xff] }
 0x3ee   :  { %v776_v57 = vpop.permute.xlu0 %775  ;;  %v778_v59 = vpop.permute.xlu1 %777 }
 0x3ef   :  { %v784_v58 = vmax.f32 %v769_v41, %v776_v57  ;;  %v785_v60 = vmax.f32 %v770_v42, %v778_v59 }
 0x3f1   :  { %1528 = vmatmul.msk.f32.vlgmr.msra.gmra.mxu1 %vm438_vm8, %v784_v58 }
 0x3f2   :  { %1231 = vmatpush.msra.mxu1 %v1215_v12 }
 0x3f4   :  { %1232 = vmatpush.msra.mxu1 %v1214_v13 }
 0x3f6   :  { %1233 = vmatpush.msra.mxu1 %v1213_v14 }
 0x3f8   :  { %1234 = vmatpush.msra.mxu1 %v1212_v15 }
 0x3f9   :  { %1529 = vmatmul.msk.f32.gmra.mxu1 %vm438_vm8, %v785_v60  ;;  %v1098_v60 = vld [vmem:[%s2290_s12 + $0x8] sm:$0xff] }
 0x3fa   :  { %1235 = vmatpush.msra.mxu1 %v1211_v16 }
 0x3fc   :  { %1236 = vmatpush.msra.mxu1 %v1210_v17 }
 0x401   :  { %1530 = vmatmul.msk.f32.gmra.mxu1 %vm438_vm8, %v786_v62 }
 0x46e   :  { %v832_v1 = vpop.f32.mrf.mxu1 }
 0x46f   :  { %1531 = vmatpush.msk.msra.mxu2 %vm314_vm6, %v832_v1 }
 0x470   :  { %1532 = vmatmul.msk.f32.vlgmr.msra.gmra.mxu2 %vm842_vm11, %v841_v0 }
 0x476   :  { %v835_v2 = vpop.f32.mrf.mxu1 }
 0x477   :  { %v871_v4 = vrot.slane %v835_v2, 2  ;;  %v1138_v2 = vld [vmem:[%s2289_s11] sm:$0x3] }
 0x47e   :  { %v838_v3 = vpop.f32.mrf.mxu1 }
 0x47f   :  { %v872_v5 = vrot.slane %v838_v3, 2 }
 0x481   :  { %v873_v6 = vsel %vm339_vm7, %v871_v4, %v872_v5 }
 0x482   :  { %1533 = vmatpush.msk.msrb.mxu2 %vm314_vm6, %v873_v6 }
 0x483   :  { %1534 = vmatmul.msk.f32.vlgmr.msrb.gmra.mxu2 %vm842_vm11, %v841_v0 }
 0x484   :  { %1602 = vmatpush.msk.msra.mxu2 %vm314_vm6, %v1104_v28  ;;  %v1245_v28 = vld [vmem:[%s2293_s15 + $0x8] sm:$0xff] }
 0x486   :  { %1124 = vmatpush.msra.mxu2 %v1103_v29  ;;  %v1244_v29 = vld [vmem:[%s2293_s15] sm:$0xff] }
 0x488   :  { %1125 = vmatpush.msra.mxu2 %v1102_v30  ;;  %v1279_v30 = vld [vmem:[%s2295_s17 + $0x18] sm:$0xff] }
 0x48a   :  { %1126 = vmatpush.msra.mxu2 %v1101_v32 }
 0x48c   :  { %1127 = vmatpush.msra.mxu2 %v1100_v34 }
 0x48e   :  { %1128 = vmatpush.msra.mxu2 %v1099_v35  ;;  %v1278_v35 = vld [vmem:[%s2295_s17 + $0x10] sm:$0xff] }
 0x490   :  { %1129 = vmatpush.msra.mxu2 %v1098_v60 }
 0x492   :  { %1130 = vmatpush.msra.mxu2 %v1097_v61 }
 0x4f3   :  { %v866_v18 = vpop.f32.mrf.mxu2 }
 0x4f4   :  { %v897_v19 = vrot.slane %v866_v18, 7  ;;  %v1209_v18 = vld [vmem:[%s2291_s13 + $0x8] sm:$0xff] }
 0x4f5   :  { %1237 = vmatpush.msra.mxu1 %v1209_v18 }
 0x4f6   :  { %v902_v20 = vsel %vm131_vm2, 0.0, %v897_v19  ;;  %v1208_v19 = vld [vmem:[%s2291_s13] sm:$0xff] }
 0x4f7   :  { %v904_v21 = vsel %vm903_vm12, %v902_v20, 0.0  ;;  %1238 = vmatpush.msra.mxu1 %v1208_v19  ;;  %v1247_v20 = vld [vmem:[%s2293_s15 + $0x18] sm:$0xff] }
 0x4f8   :  { %v905_v24 = vsel %vm339_vm7, %v904_v21, 0.0 }
 0x506   :  { %v893_v22 = vpop.f32.mrf.mxu2 }
 0x507   :  { %v900_v23 = vrot.slane %v893_v22, 1 }
 0x509   :  { %v906_v25 = vsel %vm314_vm6, %v905_v24, %v900_v23  ;;  %v907_v26 = vsel %vm140_vm5, %v900_v23, 0.0 }
 0x50a   :  { %v908_v27 = vpack.c.bf16 %v907_v26, %v906_v25 }
 0x50c   :  { %1551 = vmatmul.msk.bf16.vlgmr.msra.gmra.mxu3 %vm593_vm10, %v908_v27  ;;  %1576 = vmatmul.msk.bf16.vlgmr.msrb.gmra.mxu0 %vm593_vm10, %v908_v27 }
 0x50d   :  { %1601 = vmatmul.msk.bf16.vlgmr.msrb.gmra.mxu1 %vm593_vm10, %v908_v27  ;;  %v1246_v27 = vld [vmem:[%s2293_s15 + $0x10] sm:$0xff] }
 0x589   :  { %v1000_v31 = vpop.f32.mrf.mxu0 }
 0x58a   :  { %v1047_v33 = vpop.f32.mrf.mxu1  ;;  %v1054_v38 = vrot.slane %v1000_v31, 1  ;;  %v1673_v31 = vld [vmem:[%s2292_s14] ss:$0 sm:$0xff] }
 0x58b   :  { %v1063_v42 = vrot.slane %v1047_v33, 2 }
 0x58f   :  { %v953_v36 = vpop.f32.mrf.mxu3 }
 0x591   :  { %v1002_v37 = vpop.f32.mrf.mxu0 }
 0x592   :  { %v1055_v39 = vrot.slane %v1002_v37, 1  ;;  %v1049_v40 = vpop.f32.mrf.mxu1  ;;  %v1276_v37 = vld [vmem:[%s2295_s17] sm:$0xff] }
 0x593   :  { %v1064_v41 = vrot.slane %v1049_v40, 2 }
 0x594   :  { %v1056_v43 = vsel %vm314_vm6, %v1054_v38, %v1055_v39  ;;  %v1674_v38 = vld [vmem:[%s2294_s16] ss:$0 sm:$0xff]  ;;  %s1712_s16 = smov [#allocation2]  }
 0x595   :  { %v1059_v44 = vadd.f32 %v1056_v43, %v953_v36  ;;  %v1065_v46 = vsel %vm339_vm7, %v1063_v42, %v1064_v41  ;;  %v1277_v36 = vld [vmem:[%s2295_s17 + $0x8] sm:$0xff]  ;;  %v1307_v42 = vld [vmem:[%s2297_s19] sm:$0xff] }
 0x596   :  { %1327 = vmatpush.msrb.mxu2 %v1307_v42  ;;  %v1675_v43 = vld [vmem:[%s2296_s18] ss:$0 sm:$0xff]  ;;  %s1369_s18 = sshll.u32 %s1712_s16, 4  ;;  %s1370_s18 = int_to_ptr.vmem [resolvable:$true] %s1369_s18 }
 0x597   :  { %v1068_v47 = vadd.f32 %v1065_v46, %v1059_v44  ;;  %v955_v48 = vpop.f32.mrf.mxu3  ;;  %v1676_v44 = vld [vmem:[%s2298_s20] ss:$0 sm:$0xff] }
 0x598   :  { %v1060_v49 = vadd.f32 %v1055_v39, %v955_v48 }
 0x599   :  { %v1074_v50 = vadd.f32 %v1672_v45, %v1068_v47 }
 0x59a   :  { %v1069_v51 = vadd.f32 %v1064_v41, %v1060_v49 }
 0x59b   :  { %v1076_v53 = vmax.f32 %v1074_v50, 0.0 }
 0x59c   :  { %v1075_v52 = vadd.f32 %v1672_v45, %v1069_v51 }
 0x59d   :  { %v1080_v56 = vrot.slane %v1076_v53, 1 }
 0x59e   :  { %v1077_v54 = vmax.f32 %v1075_v52, 0.0 }
 0x5a0   :  { %v1081_v55 = vrot.slane %v1077_v54, 1 }
 0x5a2   :  { %v1086_v57 = vmax.f32 %v1077_v54, %v1081_v55  ;;  %v1082_v58 = vsel %vm314_vm6, %v1080_v56, %v1081_v55 }
 0x5a3   :  { %v1085_v59 = vmax.f32 %v1076_v53, %v1082_v58 }
 0x5a4   :  { %1091 = vrot.lane.b32.xlu1 %v1086_v57, %s1711_s2 }
 0x5a5   :  { %1089 = vrot.lane.b32.xlu0 %v1085_v59, %s1711_s2 }
 0x616   :  { %v1092_v0 = vpop.permute.xlu1 %1091 }
 0x617   :  { %v1090_v62 = vpop.permute.xlu0 %1089  ;;  %v1096_v1 = vmax.f32 %v1086_v57, %v1092_v0 }
 0x618   :  { %v1095_v63 = vmax.f32 %v1085_v59, %v1090_v62 }
 0x61a   :  { %1603 = vmatmul.msk.f32.vlgmr.msra.gmra.mxu2 %vm1105_vm13, %v1095_v63 }
 0x622   :  { %1604 = vmatmul.msk.f32.gmra.mxu2 %vm1105_vm13, %v1096_v1 }
 0x69d   :  { %v1132_v3 = vpop.f32.mrf.mxu2 }
 0x69e   :  { %1605 = vmatpush.msk.msrb.mxu3 %vm140_vm5, %v1132_v3  ;;  %v1167_v5 = vrot.slane %v1132_v3, 6 }
 0x69f   :  { %1606 = vmatmul.msk.f32.vlgmr.msrb.gmra.mxu3 %vm1139_vm14, %v1138_v2 }
 0x6a0   :  { %1267 = vmatpush.msra.mxu3 %v1247_v20 }
 0x6a2   :  { %1268 = vmatpush.msra.mxu3 %v1246_v27 }
 0x6a4   :  { %1269 = vmatpush.msra.mxu3 %v1245_v28 }
 0x6a5   :  { %v1135_v4 = vpop.f32.mrf.mxu2 }
 0x6a6   :  { %v1168_v6 = vrot.slane %v1135_v4, 6  ;;  %1270 = vmatpush.msra.mxu3 %v1244_v29 }
 0x6a8   :  { %v1169_v7 = vsel %vm149_vm4, %v1167_v5, %v1168_v6 }
 0x6a9   :  { %1607 = vmatpush.msk.msra.mxu0 %vm140_vm5, %v1169_v7 }
 0x6aa   :  { %1608 = vmatmul.msk.f32.vlgmr.msra.gmra.mxu0 %vm1139_vm14, %v1138_v2 }
 0x6ab   :  { %1299 = vmatpush.msrb.mxu0 %v1279_v30 }
 0x6ad   :  { %1300 = vmatpush.msrb.mxu0 %v1278_v35 }
 0x6af   :  { %1301 = vmatpush.msrb.mxu0 %v1277_v36 }
 0x6b1   :  { %1302 = vmatpush.msrb.mxu0 %v1276_v37 }
 0x722   :  { %v1163_v8 = vpop.f32.mrf.mxu3 }
 0x723   :  { %v1193_v9 = vrot.slane %v1163_v8, 1 }
 0x725   :  { %1194 = vrot.lane.b32.xlu0 %v1193_v9, %s1710_s3 }
 0x727   :  { %v1189_v10 = vpop.f32.mrf.mxu0 }
 0x728   :  { %v1199_v11 = vrot.slane %v1189_v10, 1 }
 0x72a   :  { %1200 = vrot.lane.b32.xlu2 %v1199_v11, %s1710_s3 }
 0x784   :  { %v1201_v21 = vpop.permute.xlu2 %1200 }
 0x785   :  { %v1203_v22 = vsel %vm97_vm1, %v1189_v10, %v1201_v21 }
 0x786   :  { %v1205_v23 = vrot.slane %v1203_v22, 7 }
 0x797   :  { %v1195_v24 = vpop.permute.xlu0 %1194 }
 0x798   :  { %v1197_v25 = vsel %vm97_vm1, %v1163_v8, %v1195_v24 }
 0x799   :  { %v1207_v26 = vsel %vm131_vm2, %v1197_v25, %v1205_v23 }
 0x79a   :  { %1609 = vmatmul.msk.f32.vlgmr.msra.gmra.mxu1 %vm593_vm10, %v1207_v26 }
 0x817   :  { %v1240_v32 = vpop.f32.mrf.mxu1 }
 0x818   :  { %v1241_v33 = vadd.f32 %v1673_v31, %v1240_v32 }
 0x81a   :  { %v1243_v34 = vmax.f32 %v1241_v33, 0.0 }
 0x81c   :  { %1610 = vmatmul.msk.f32.vlgmr.msra.gmra.mxu3 %vm97_vm1, %v1243_v34 }
 0x89f   :  { %v1272_v39 = vpop.f32.mrf.mxu3 }
 0x8a0   :  { %v1273_v40 = vadd.f32 %v1674_v38, %v1272_v39 }
 0x8a2   :  { %v1275_v41 = vmax.f32 %v1273_v40, 0.0 }
 0x8a4   :  { %1611 = vmatmul.msk.f32.vlgmr.msrb.gmra.mxu0 %vm97_vm1, %v1275_v41 }
 0x921   :  { %v1304_v45 = vpop.f32.mrf.mxu0 }
 0x922   :  { %v1305_v46 = vadd.f32 %v1675_v43, %v1304_v45 }
 0x924   :  { %1612 = vmatmul.msk.f32.vlgmr.msrb.gmra.mxu2 %vm1308_vm15, %v1305_v46  ;;  %v1336_v47 = vmul.f32 %v1676_v44, %v1305_v46 }
 0x926   :  { %v1338_v48 = vsel %vm1337_vm0, %v1336_v47, 0.0 }
 0x927   :  { %1339 = vadd.xlane.f32.xlu2 %v1338_v48 }
 0x99a   :  { %v1340_v52 = vpop.xlane.xlu2 %1339 }
 0x99b   :  { %v1357_v53 = vsub.f32 0.0, %v1340_v52 }
 0x99d   :  { %v1358_v54 = vmul.f32 1.442695, %v1357_v53 }
 0x99f   :  { %1677 = vpow2.f32 %v1358_v54 }
 0x9a5   :  { %v1678_v57 = vpop.eup %1677 }
 0x9a6   :  { %v1360_v60 = vadd.f32 1.0, %v1678_v57 }
 0x9a7   :  { %v1329_v49 = vpop.f32.mrf.mxu2 }
 0x9a8   :  { %v1341_v50 = vmul.f32 %v1329_v49, %v1329_v49 }
 0x9aa   :  { %v1342_v51 = vsel %vm1337_vm0, %v1341_v50, 0.0 }
 0x9ab   :  { %1343 = vadd.xlane.f32.xlu1 %v1342_v51 }
 0xa1e   :  { %v1344_v55 = vpop.xlane.xlu1 %1343 }
 0xa1f   :  { %v1345_v56 = vadd.f32 1e-12, %v1344_v55 }
 0xa21   :  { %1679 = vrsqrt.f32 %v1345_v56  ;;  %vm1352_vm2 = vweird.f32 %v1345_v56 }
 0xa22   :  { %1681 = vrcp.f32 %v1360_v60 }
 0xa27   :  { %v1680_v58 = vpop.eup %1679 }
 0xa28   :  { %v1347_v59 = vmul.f32 %v1680_v58, %v1345_v56  ;;  %vm1353_vm1 = vweird.f32 %v1680_v58  ;;  %v1682_v3 = vpop.eup %1681 }
 0xa29   :  { %vm1354_vm3 = vmor %vm1352_vm2, %vm1353_vm1 }
 0xa2a   :  { %v1348_v61 = vmul.f32 %v1680_v58, %v1347_v59 }
 0xa2c   :  { %v1349_v62 = vmul.f32 0.5, %v1348_v61 }
 0xa2e   :  { %v1350_v63 = vsub.f32 1.5, %v1349_v62 }
 0xa30   :  { %v1351_v0 = vmul.f32 %v1680_v58, %v1350_v63 }
 0xa32   :  { %v1355_v1 = vsel %vm1354_vm3, %v1680_v58, %v1351_v0 }
 0xa33   :  { %v1356_v2 = vmul.f32 %v1355_v1, %v1329_v49 }
 0xa35   :  { %v1362_v4 = vmul.f32 %v1682_v3, %v1356_v2 }
 0xa37   :  { %1363 = vst.msk [vmem:[#allocation2] sm:$0x3] %vm1337_vm0, %v1362_v4 }
 0xa38   :  { %1374 = dma.vmem_to_hbm [thread:$0]  %s1370_s18, 32, %s1372_s10, [#allocation3]  }
 0xa39   :  { %1707 = dma.done.wait [#allocation3], 32  }
 0xa3a   :  { %1708 = vsyncadd [#allocation3], 4294967264 }
 0xa3b   :  { %1379 = vsyncpa [#allocation3], 1 }

</bundles_post_ra>
